<compile_context>
chip_gen: v6e
topology: v6e:2x2x1
jax: 0.10.0
libtpu: 0.0.40
codegen_flags: <defaults>
</compile_context>

<pallas_src>
import functools

import jax
import jax.numpy as jnp
import numpy as np
from jax import lax
from jax.experimental import pallas as pl
from jax.experimental.pallas import tpu as pltpu

# ----------------------------- model dimensions ------------------------------
B = 2        # batch
T = 1024     # audio length (samples) -- multiple of 128 (lane width)
T_TILE = 256 # time tile per grid step (multiple of 128, divides T)
H = 32       # encoder hidden channels
K = 3        # conv kernel size
PAD = K // 2
NBITS = 16   # watermark message bits
ALPHA = 1.0
LANE = 128   # TPU lane width


# --------------------------------- kernel ------------------------------------
def _audioseal_kernel(x_ref, xl_ref, xr_ref, w_ref, bm_ref, decb_ref, out_ref,
                      *, k, pad, alpha, compute_dtype):
    """One time tile, whole batch.

    x_ref    : [B, Wt]     current audio tile (lane-dense)
    xl_ref   : [B, 128]    128-block immediately left of the tile (clamped)
    xr_ref   : [B, 128]    128-block immediately right of the tile (clamped)
    w_ref    : [H, 2K]     enc_w (cols 0..K-1) and dec_w (cols K..2K-1)
    bm_ref   : [B, H, 1]   encoder bias + per-batch message embedding
    decb_ref : [1, 1]      decoder bias
    out_ref  : [B, Wt]     x + alpha * watermark
    """
    i = pl.program_id(0)
    n = pl.num_programs(0)
    bsz, wt = x_ref.shape
    te_al = wt + LANE                 # lane-aligned hidden width (>= wt + 2*pad)
    enc_off = LANE - 2 * pad          # slice start for encoder tap 0

    x = x_ref[...]                                            # [B, Wt] (f32)
    # halo blocks: only the 2 samples adjacent to the tile are ever read;
    # zero them at the global edges (matches the conv zero padding).
    lmask = jnp.where(i == 0, 0.0, 1.0).astype(x.dtype)
    rmask = jnp.where(i == n - 1, 0.0, 1.0).astype(x.dtype)
    xe = jnp.concatenate([xl_ref[...] * lmask, x, xr_ref[...] * rmask],
                         axis=-1)                             # [B, Wt + 256], seams lane-aligned
    xe = xe.astype(compute_dtype)

    wts = w_ref[...].astype(compute_dtype)                    # [H, 2K]
    bm = bm_ref[...].astype(compute_dtype)                    # [B, H, 1]

    # ---- encoder: Conv1d(1 -> H) -> hidden [B, H, Te_al] (VPU broadcast MACs) ----
    hidden = None
    for kk in range(k):                                       # K tiny & static -> unrolled
        xs = xe[:, enc_off + kk: enc_off + kk + te_al]        # [B, Te_al] small-operand shift
        wk = wts[:, kk:kk + 1]                                # [H, 1] encoder tap
        term = wk[None, :, :] * xs[:, None, :]                # [B, H, Te_al]
        hidden = term if hidden is None else hidden + term

    # ---- message processor (additive embedding) + ELU (no redundant clamp) ----
    hidden = hidden + bm                                      # broadcast over time
    hidden = jnp.where(hidden > 0, hidden, jnp.exp(hidden) - 1.0)

    # ---- decoder: Conv1d(H -> 1). Reduce over H per tap on the lane-aligned
    #      full-width hidden, then shift only the small [B, Te_al] result. ----
    wm = None
    for kk in range(k):
        dk = wts[:, k + kk:k + kk + 1]                        # [H, 1] decoder tap
        g = jnp.sum(dk[None, :, :] * hidden, axis=1)          # [B, Te_al] sublane reduce
        g = g.astype(jnp.float32)
        gs = g[:, kk:kk + wt]                                 # [B, Wt] tiny unaligned shift
        wm = gs if wm is None else wm + gs
    wm = jnp.tanh(wm + decb_ref[...])                         # (1,1) bias broadcasts

    # ---- residual: out = x + alpha * wm (lane-dense, unmasked store) ---------
    out_ref[...] = (x + alpha * wm).astype(out_ref.dtype)


# -------------------------------- wrapper -------------------------------------
def audioseal_forward(x, enc_w, enc_b, emb_table, dec_w, dec_b, message,
                      alpha=1.0, t_tile=T_TILE, compute_dtype=jnp.float32,
                      vmem_limit_bytes=None):
    """x: [B, 1, T] float32 (NCT), message: [B, NBITS] int32 in {0,1}.

    Generation guidance:
      v7x : t_tile ~ 8K-16K (keep hidden+acc+double-buffered x/out <= ~16-24 MiB
            of its 64 MiB VMEM), compute_dtype=jnp.bfloat16 OK.
      v6e : t_tile ~ 32K-64K, raise vmem_limit_bytes above the 32 MiB default,
            compute_dtype=jnp.bfloat16 OK.
      v5e : t_tile ~ 16K-32K, raise vmem_limit_bytes (16 MiB default), keep f32.
    """
    b, c, t = x.shape
    assert c == 1
    assert t % LANE == 0, "this kernel assumes T is a multiple of 128"
    t_tile = min(t_tile, t)
    assert t_tile % LANE == 0 and t % t_tile == 0, \
        "t_tile must be a multiple of 128 and divide T"  # TODO(synk): pad ragged T

    nblk = t_tile // LANE
    num_tiles = t // t_tile
    last_blk = t // LANE - 1

    x2 = x.reshape(b, t)                                       # lane-dense [B, T] slab
    w = jnp.concatenate([enc_w, dec_w], axis=1)                # [H, 2K] single block

    # message embedding (AudioSeal MsgProcessor): sum of per-bit embeddings
    idx = jnp.arange(NBITS)[None, :] * 2 + message             # [B, NBITS]
    msg_emb = jnp.sum(emb_table[idx], axis=1)                  # [B, H]
    bias_msg = (enc_b[None, :] + msg_emb)[..., None]           # [B, H, 1]
    dec_b_v = dec_b.reshape(1, 1)                              # [1, 1]

    kernel = functools.partial(_audioseal_kernel, k=K, pad=PAD, alpha=alpha,
                               compute_dtype=compute_dtype)

    in_specs = [
        # current tile
        pl.BlockSpec((b, t_tile), lambda i: (0, i)),
        # 128-block left of the tile (clamped at i==0; zero-masked in kernel)
        pl.BlockSpec((b, LANE), lambda i: (0, jnp.maximum(i * nblk - 1, 0))),
        # 128-block right of the tile (clamped at the last tile)
        pl.BlockSpec((b, LANE), lambda i: (0, jnp.minimum((i + 1) * nblk, last_blk))),
        # fused encoder|decoder weights, bias+message, decoder bias (grid-invariant)
        pl.BlockSpec((H, 2 * K), lambda i: (0, 0)),
        pl.BlockSpec((b, H, 1), lambda i: (0, 0, 0)),
        pl.BlockSpec((1, 1), lambda i: (0, 0)),
    ]

    out = pl.pallas_call(
        kernel,
        out_shape=jax.ShapeDtypeStruct((b, t), x.dtype),
        grid=(num_tiles,),
        in_specs=in_specs,
        out_specs=pl.BlockSpec((b, t_tile), lambda i: (0, i)),
        compiler_params=pltpu.CompilerParams(
            dimension_semantics=("parallel",),
            vmem_limit_bytes=vmem_limit_bytes),
    )(x2, x2, x2, w, bias_msg, dec_b_v)

    return out.reshape(b, 1, t)


# ----------------------------- pure-JAX reference -----------------------------
def reference_forward(x, enc_w, enc_b, emb_table, dec_w, dec_b, message,
                      alpha=1.0):
    x_pad = jnp.pad(x, ((0, 0), (0, 0), (2 * PAD, 2 * PAD)))
    hidden = lax.conv_general_dilated(
        x_pad, enc_w[:, None, :], (1,), 'VALID',
        dimension_numbers=('NCH', 'OIH', 'NCH'))                 # [B, H, T+2*PAD]
    idx = jnp.arange(NBITS)[None, :] * 2 + message
    msg_emb = jnp.sum(emb_table[idx], axis=1)                     # [B, H]
    hidden = hidden + enc_b[None, :, None] + msg_emb[:, :, None]
    hidden = jnp.where(hidden > 0, hidden, jnp.exp(hidden) - 1.0)
    wm = lax.conv_general_dilated(
        hidden, dec_w[None, :, :], (1,), 'VALID',
        dimension_numbers=('NCH', 'OIH', 'NCH')) + dec_b          # [B, 1, T]
    wm = jnp.tanh(wm)
    return x + alpha * wm


# ---------------------------------- main --------------------------------------
if __name__ == "__main__":
    key = jax.random.PRNGKey(0)
    k_x, k_msg, k_ew, k_eb, k_emb, k_dw, k_db = jax.random.split(key, 7)

    # deterministic example inputs
    x = jax.random.normal(k_x, (B, 1, T), dtype=jnp.float32)       # audio, NCT
    message = jax.random.randint(k_msg, (B, NBITS), 0, 2, dtype=jnp.int32)

    # deterministic synthetic parameters
    enc_w = 0.1 * jax.random.normal(k_ew, (H, K), dtype=jnp.float32)
    enc_b = 0.1 * jax.random.normal(k_eb, (H,), dtype=jnp.float32)
    emb_table = 0.1 * jax.random.normal(k_emb, (2 * NBITS, H), dtype=jnp.float32)
    dec_w = 0.1 * jax.random.normal(k_dw, (H, K), dtype=jnp.float32)
    dec_b = 0.1 * jax.random.normal(k_db, (1, 1), dtype=jnp.float32)

    out = audioseal_forward(x, enc_w, enc_b, emb_table, dec_w, dec_b, message,
                            alpha=ALPHA)
    out = jax.block_until_ready(out)

    ref = reference_forward(x, enc_w, enc_b, emb_table, dec_w, dec_b, message,
                            alpha=ALPHA)
    np.testing.assert_allclose(np.asarray(out), np.asarray(ref),
                               rtol=1e-5, atol=1e-5)

    # TODO(synk): julius.resample_frac (sample_rate != 16000 path) has no clean
    # Pallas equivalent and is omitted (we assume 16 kHz input).
    print("KERNEL_OK")
</pallas_src>

<mosaic_0001>
module attributes {stable_mosaic.version = 11 : i64} {
  func.func @_audioseal_kernel(%arg0: i32, %arg1: memref<2x256xf32, #tpu.memory_space<vmem>>, %arg2: memref<2x128xf32, #tpu.memory_space<vmem>>, %arg3: memref<2x128xf32, #tpu.memory_space<vmem>>, %arg4: memref<32x6xf32, #tpu.memory_space<vmem>>, %arg5: memref<2x32x1xf32, #tpu.memory_space<vmem>>, %arg6: memref<1x1xf32, #tpu.memory_space<vmem>>, %arg7: memref<2x256xf32, #tpu.memory_space<vmem>>) attributes {dimension_semantics = [#tpu.dimension_semantics<parallel>], iteration_bounds = array<i64: 4>, scalar_prefetch = 0 : i64, scratch_operands = 0 : i64, tpu.core_type = #tpu.core_type<tc>, window_params = [{transform_indices = @transform_0, window_bounds = array<i64: 2, 256>}, {transform_indices = @transform_1, window_bounds = array<i64: 2, 128>}, {transform_indices = @transform_2, window_bounds = array<i64: 2, 128>}, {pipeline_mode = #tpu.pipeline_mode<synchronous>, transform_indices = @transform_3, window_bounds = array<i64: 32, 6>}, {pipeline_mode = #tpu.pipeline_mode<synchronous>, transform_indices = @transform_4, window_bounds = array<i64: 2, 32, 1>}, {pipeline_mode = #tpu.pipeline_mode<synchronous>, transform_indices = @transform_5, window_bounds = array<i64: 1, 1>}, {transform_indices = @transform_6, window_bounds = array<i64: 2, 256>}]} {
    %c0 = arith.constant 0 : index
    %c0_0 = arith.constant 0 : index
    %0 = vector.load %arg1[%c0, %c0_0] : memref<2x256xf32, #tpu.memory_space<vmem>>, vector<2x256xf32>
    %c0_i32 = arith.constant 0 : i32
    %1 = arith.cmpi eq, %arg0, %c0_i32 : i32
    %cst = arith.constant 0.000000e+00 : f32
    %cst_1 = arith.constant 1.000000e+00 : f32
    %2 = arith.select %1, %cst, %cst_1 : f32
    %c3_i32 = arith.constant 3 : i32
    %3 = arith.cmpi eq, %arg0, %c3_i32 : i32
    %cst_2 = arith.constant 0.000000e+00 : f32
    %cst_3 = arith.constant 1.000000e+00 : f32
    %4 = arith.select %3, %cst_2, %cst_3 : f32
    %c0_4 = arith.constant 0 : index
    %c0_5 = arith.constant 0 : index
    %5 = vector.load %arg2[%c0_4, %c0_5] : memref<2x128xf32, #tpu.memory_space<vmem>>, vector<2x128xf32>
    %6 = vector.broadcast %2 : f32 to vector<2x128xf32>
    %7 = arith.mulf %5, %6 : vector<2x128xf32>
    %c0_6 = arith.constant 0 : index
    %c0_7 = arith.constant 0 : index
    %8 = vector.load %arg3[%c0_6, %c0_7] : memref<2x128xf32, #tpu.memory_space<vmem>>, vector<2x128xf32>
    %9 = vector.broadcast %4 : f32 to vector<2x128xf32>
    %10 = arith.mulf %8, %9 : vector<2x128xf32>
    %11 = tpu.concatenate %7, %0, %10 in 1 : vector<2x128xf32>, vector<2x256xf32>, vector<2x128xf32> -> vector<2x512xf32>
    %c0_8 = arith.constant 0 : index
    %c0_9 = arith.constant 0 : index
    %12 = vector.load %arg4[%c0_8, %c0_9] : memref<32x6xf32, #tpu.memory_space<vmem>>, vector<32x6xf32>
    %c0_10 = arith.constant 0 : index
    %c0_11 = arith.constant 0 : index
    %c0_12 = arith.constant 0 : index
    %13 = vector.load %arg5[%c0_10, %c0_11, %c0_12] : memref<2x32x1xf32, #tpu.memory_space<vmem>>, vector<2x32x1xf32>
    %14 = vector.extract_strided_slice %11 {offsets = [0, 126], sizes = [2, 384], strides = [1, 1]} : vector<2x512xf32> to vector<2x384xf32>
    %15 = vector.extract_strided_slice %12 {offsets = [0, 0], sizes = [32, 1], strides = [1, 1]} : vector<32x6xf32> to vector<32x1xf32>
    %16 = vector.shape_cast %15 : vector<32x1xf32> to vector<1x32x1xf32>
    %17 = vector.shape_cast %14 : vector<2x384xf32> to vector<2x1x384xf32>
    %18 = vector.broadcast %16 : vector<1x32x1xf32> to vector<2x32x384xf32>
    %19 = vector.broadcast %17 : vector<2x1x384xf32> to vector<2x32x384xf32>
    %20 = arith.mulf %18, %19 : vector<2x32x384xf32>
    %21 = vector.extract_strided_slice %11 {offsets = [0, 127], sizes = [2, 384], strides = [1, 1]} : vector<2x512xf32> to vector<2x384xf32>
    %22 = vector.extract_strided_slice %12 {offsets = [0, 1], sizes = [32, 1], strides = [1, 1]} : vector<32x6xf32> to vector<32x1xf32>
    %23 = vector.shape_cast %22 : vector<32x1xf32> to vector<1x32x1xf32>
    %24 = vector.shape_cast %21 : vector<2x384xf32> to vector<2x1x384xf32>
    %25 = vector.broadcast %23 : vector<1x32x1xf32> to vector<2x32x384xf32>
    %26 = vector.broadcast %24 : vector<2x1x384xf32> to vector<2x32x384xf32>
    %27 = arith.mulf %25, %26 : vector<2x32x384xf32>
    %28 = arith.addf %20, %27 : vector<2x32x384xf32>
    %29 = vector.extract_strided_slice %11 {offsets = [0, 128], sizes = [2, 384], strides = [1, 1]} : vector<2x512xf32> to vector<2x384xf32>
    %30 = vector.extract_strided_slice %12 {offsets = [0, 2], sizes = [32, 1], strides = [1, 1]} : vector<32x6xf32> to vector<32x1xf32>
    %31 = vector.shape_cast %30 : vector<32x1xf32> to vector<1x32x1xf32>
    %32 = vector.shape_cast %29 : vector<2x384xf32> to vector<2x1x384xf32>
    %33 = vector.broadcast %31 : vector<1x32x1xf32> to vector<2x32x384xf32>
    %34 = vector.broadcast %32 : vector<2x1x384xf32> to vector<2x32x384xf32>
    %35 = arith.mulf %33, %34 : vector<2x32x384xf32>
    %36 = arith.addf %28, %35 : vector<2x32x384xf32>
    %37 = vector.broadcast %13 : vector<2x32x1xf32> to vector<2x32x384xf32>
    %38 = arith.addf %36, %37 : vector<2x32x384xf32>
    %cst_13 = arith.constant 0.000000e+00 : f32
    %39 = vector.broadcast %cst_13 : f32 to vector<2x32x384xf32>
    %40 = arith.cmpf ogt, %38, %39 : vector<2x32x384xf32>
    %41 = math.exp %38 : vector<2x32x384xf32>
    %cst_14 = arith.constant 1.000000e+00 : f32
    %42 = vector.broadcast %cst_14 : f32 to vector<2x32x384xf32>
    %43 = arith.subf %41, %42 : vector<2x32x384xf32>
    %44 = arith.select %40, %38, %43 : vector<2x32x384xi1>, vector<2x32x384xf32>
    %45 = vector.extract_strided_slice %12 {offsets = [0, 3], sizes = [32, 1], strides = [1, 1]} : vector<32x6xf32> to vector<32x1xf32>
    %46 = vector.shape_cast %45 : vector<32x1xf32> to vector<1x32x1xf32>
    %47 = vector.broadcast %46 : vector<1x32x1xf32> to vector<2x32x384xf32>
    %48 = arith.mulf %47, %44 : vector<2x32x384xf32>
    %cst_15 = arith.constant dense<0.000000e+00> : vector<2x384xf32>
    %49 = vector.multi_reduction <add>, %48, %cst_15 [1] : vector<2x32x384xf32> to vector<2x384xf32>
    %50 = vector.extract_strided_slice %49 {offsets = [0, 0], sizes = [2, 256], strides = [1, 1]} : vector<2x384xf32> to vector<2x256xf32>
    %51 = vector.extract_strided_slice %12 {offsets = [0, 4], sizes = [32, 1], strides = [1, 1]} : vector<32x6xf32> to vector<32x1xf32>
    %52 = vector.shape_cast %51 : vector<32x1xf32> to vector<1x32x1xf32>
    %53 = vector.broadcast %52 : vector<1x32x1xf32> to vector<2x32x384xf32>
    %54 = arith.mulf %53, %44 : vector<2x32x384xf32>
    %cst_16 = arith.constant dense<0.000000e+00> : vector<2x384xf32>
    %55 = vector.multi_reduction <add>, %54, %cst_16 [1] : vector<2x32x384xf32> to vector<2x384xf32>
    %56 = vector.extract_strided_slice %55 {offsets = [0, 1], sizes = [2, 256], strides = [1, 1]} : vector<2x384xf32> to vector<2x256xf32>
    %57 = arith.addf %50, %56 : vector<2x256xf32>
    %58 = vector.extract_strided_slice %12 {offsets = [0, 5], sizes = [32, 1], strides = [1, 1]} : vector<32x6xf32> to vector<32x1xf32>
    %59 = vector.shape_cast %58 : vector<32x1xf32> to vector<1x32x1xf32>
    %60 = vector.broadcast %59 : vector<1x32x1xf32> to vector<2x32x384xf32>
    %61 = arith.mulf %60, %44 : vector<2x32x384xf32>
    %cst_17 = arith.constant dense<0.000000e+00> : vector<2x384xf32>
    %62 = vector.multi_reduction <add>, %61, %cst_17 [1] : vector<2x32x384xf32> to vector<2x384xf32>
    %63 = vector.extract_strided_slice %62 {offsets = [0, 2], sizes = [2, 256], strides = [1, 1]} : vector<2x384xf32> to vector<2x256xf32>
    %64 = arith.addf %57, %63 : vector<2x256xf32>
    %c0_18 = arith.constant 0 : index
    %c0_19 = arith.constant 0 : index
    %65 = vector.load %arg6[%c0_18, %c0_19] : memref<1x1xf32, #tpu.memory_space<vmem>>, vector<1x1xf32>
    %66 = vector.broadcast %65 : vector<1x1xf32> to vector<2x256xf32>
    %67 = arith.addf %64, %66 : vector<2x256xf32>
    %68 = math.tanh %67 : vector<2x256xf32>
    %cst_20 = arith.constant 1.000000e+00 : f32
    %69 = vector.broadcast %cst_20 : f32 to vector<2x256xf32>
    %70 = arith.mulf %69, %68 : vector<2x256xf32>
    %71 = arith.addf %0, %70 : vector<2x256xf32>
    %c0_21 = arith.constant 0 : index
    %c0_22 = arith.constant 0 : index
    %72 = vector.load %arg7[%c0_21, %c0_22] : memref<2x256xf32, #tpu.memory_space<vmem>>, vector<2x256xf32>
    tpu.vector_store %arg7[%c0_21, %c0_22], %71 {strides = array<i32>} : memref<2x256xf32, #tpu.memory_space<vmem>>, vector<2x256xf32>,
    return
  }
  func.func @transform_0(%arg0: i32) -> (i32, i32) {
    %c0_i32 = arith.constant 0 : i32
    %c0_i32_0 = arith.constant 0 : i32
    return %c0_i32, %arg0 : i32, i32
  }
  func.func @transform_1(%arg0: i32) -> (i32, i32) {
    %c2_i32 = arith.constant 2 : i32
    %0 = arith.muli %arg0, %c2_i32 : i32
    %c1_i32 = arith.constant 1 : i32
    %1 = arith.subi %0, %c1_i32 : i32
    %c0_i32 = arith.constant 0 : i32
    %2 = arith.maxsi %1, %c0_i32 : i32
    %c0_i32_0 = arith.constant 0 : i32
    %c0_i32_1 = arith.constant 0 : i32
    return %c0_i32_0, %2 : i32, i32
  }
  func.func @transform_2(%arg0: i32) -> (i32, i32) {
    %c1_i32 = arith.constant 1 : i32
    %0 = arith.addi %arg0, %c1_i32 : i32
    %c2_i32 = arith.constant 2 : i32
    %1 = arith.muli %0, %c2_i32 : i32
    %c7_i32 = arith.constant 7 : i32
    %2 = arith.minsi %1, %c7_i32 : i32
    %c0_i32 = arith.constant 0 : i32
    %c0_i32_0 = arith.constant 0 : i32
    return %c0_i32, %2 : i32, i32
  }
  func.func @transform_3(%arg0: i32) -> (i32, i32) {
    %c0_i32 = arith.constant 0 : i32
    %c0_i32_0 = arith.constant 0 : i32
    %c0_i32_1 = arith.constant 0 : i32
    return %c0_i32, %c0_i32_0 : i32, i32
  }
  func.func @transform_4(%arg0: i32) -> (i32, i32, i32) {
    %c0_i32 = arith.constant 0 : i32
    %c0_i32_0 = arith.constant 0 : i32
    %c0_i32_1 = arith.constant 0 : i32
    %c0_i32_2 = arith.constant 0 : i32
    return %c0_i32, %c0_i32_0, %c0_i32_1 : i32, i32, i32
  }
  func.func @transform_5(%arg0: i32) -> (i32, i32) {
    %c0_i32 = arith.constant 0 : i32
    %c0_i32_0 = arith.constant 0 : i32
    %c0_i32_1 = arith.constant 0 : i32
    return %c0_i32, %c0_i32_0 : i32, i32
  }
  func.func @transform_6(%arg0: i32) -> (i32, i32) {
    %c0_i32 = arith.constant 0 : i32
    %c0_i32_0 = arith.constant 0 : i32
    return %c0_i32, %arg0 : i32, i32
  }
}

</mosaic_0001>

<bundles_post_ra>
// kernel: tpu_custom_call.1
= control target key start
LH: loop header
LB: loop body
LE: loop exit
PB: predicated region body
PF: predicated region fallthrough
CT: control target
= control target key end

     0   :  { %s3012_s0 = inlined_call_operand.vmem [shape: f32[2,1024], index: 0, kind: input, shape index: {}]   ;;  %s3013_s1 = inlined_call_operand.vmem [shape: f32[2,1024], index: 1, kind: input, shape index: {}]   ;;  %s3014_s2 = inlined_call_operand.vmem [shape: f32[2,1024], index: 2, kind: input, shape index: {}]   ;;  %s3015_s3 = inlined_call_operand.vmem [shape: f32[32,6], index: 3, kind: input, shape index: {}]   ;;  %s3016_s4 = inlined_call_operand.vmem [shape: f32[2,32,1], index: 4, kind: input, shape index: {}]   ;;  %s3017_s5 = inlined_call_operand.<no memory space> [shape: f32[1,1], index: 5, kind: input, shape index: {}]   ;;  %s3018_s6 = inlined_call_operand.hbm [shape: f32[2,1024], index: 6, kind: output, shape index: {}]  }
   0x1   :  { %v11_v0 = vstv %s3017_s5 }
   0x2   :  { %12 = vst [vmem:[#allocation2] sm:$0x1] %v11_v0 }
   0x3   :  { %13 = vsyncpa [#allocation4], 0 }
   0x4   :  { %15 = vsyncpa [#allocation4 + $0x1], 0  ;;  %s1954_s23 = smov 0   ;;  %s1956_s24 = smov 0  }
   0x5   :  { %s1958_s25 = smov 0   ;;  %s1960_s26 = smov 0  }
   0x6 LB: > { %s1975_s5 = sadd.s32 4294967295, %s1902_s26   ;;  %s1646_s27 = sadd.s32 4294967294, %s1902_s26   ;;  %s1902_s26 = sphi %s1960_s26, %s3030_s26   ;;  %s1898_s25 = sphi %s1958_s25, %s3029_s25   ;;  %s1894_s24 = sphi %s1956_s24, %s3028_s24   ;;  %s1890_s23 = sphi %s1954_s23, %s3027_s23  }
   0x7   : > { %s1979_s28 = sadd.s32 1, %s1902_s26   ;;  %s185_s29 = sadd.s32 1, %s1898_s25 }
   0x8   : > { %s182_s30 = ssub.s32 %s1902_s26, %s1979_s28  ;;  %p195_p0 = scmp.ne.s32.totalorder %s1898_s25, %s1894_s24 }
   0x9   : > { %p183_p1 = scmp.eq.s32.totalorder %s182_s30, 0  ;;  %p196_p2 = scmp.eq.s32.totalorder %s1975_s5, 3 }
   0xa   : > { %p201_p3 = scmp.ne.s32.totalorder %s1894_s24, %s1890_s23  ;;  %p202_p4 = scmp.eq.s32.totalorder %s1646_s27, 3 }
   0xb   : > { %s1990_s7 = scalar_select %p183_p1, %s1898_s25, %s185_s29  }
   0xc   : > { %p1994_p5 = por %p196_p2, %p195_p0  ;;  %p1998_p6 = por %p202_p4, %p201_p3 }
   0xd   : > { %p1655_p7 = scmp.ge.s32.totalorder %s1902_s26, 1  ;;  %p268_p8 = scmp.lt.s32.totalorder %s1902_s26, 5 }
   0xf   : > { %p269_p9 = pnand %p1655_p7, %p268_p8 }
  0x11   : > { %272 = sbr.rel (%p269_p9) target bundleno = 725 (0x2d5), region = 44 }
  0x16   : > { %v2007_v1 = vld [vmem:[%s3015_s3] sm:$0xff]  ;;  %v2012_v2 = vld [vmem:[%s3015_s3 + $0x10] sm:$0xff]  ;;  %v1904_v3 = vmov 1   ;;  %v2019_v4 = vld [vmem:[%s3015_s3 + $0x8] sm:$0xff]  ;;  %s2022_s16 = sshll.u32 %s1975_s5, 1  ;;  %v1905_v5 = vmov 2   ;;  %v360_v9 = vlaneseq }
  0x17   : > { %1763 = vset.pattern.permute.xlu0 %v1904_v3  ;;  %1764 = vset.pattern.permute.xlu1 %v1904_v3  ;;  %s1711_s17 = sadd.s32 2, %s2022_s16  ;;  %p315_p10 = scmp.lt.s32.totalorder %s2022_s16, 7  ;;  %v2036_v6 = vld [vmem:[%s3015_s3 + $0x18] sm:$0xff]  ;;  %v1906_v7 = vmov 1983009808   ;;  %v1907_v12 = vmov 0  }
  0x18   : > { %486 = vperm.xlu0 %1763, %v2007_v1   ;;  %494 = vperm.xlu1 %1764, %v2012_v2   ;;  %p2028_p11 = scmp.lt.s32.totalorder %s1711_s17, 7  ;;  %v358_v8 = vunpack.c.l.s4 %v1906_v7  ;;  %v2046_v11 = vshrl.u32 %v360_v9, 7  ;;  %v373_v13 = vld [vmem:[%s3016_s4 + $0x20] sm:$0xff]  ;;  %v1908_v16 = vmov 1966171168   ;;  %v375_v22 = vld [vmem:[%s3016_s4 + $0x30] sm:$0xff] }
  0x19   : > { %s316_s21 = scalar_select %p315_p10, %s2022_s16, 7  ;;  %v382_v17 = vunpack.c.l.s4 %v1908_v16  ;;  %v369_v18 = vld [vmem:[%s3016_s4] sm:$0xff]  ;;  %v374_v26 = vld [vmem:[%s3016_s4 + $0x28] sm:$0xff]  ;;  %v376_v29 = vld [vmem:[%s3016_s4 + $0x38] sm:$0xff]  ;;  %v1909_v46 = vmov 4   ;;  %vm639_vm0 = vcmask 1039360  }
  0x1a   : > { %s3032_s17 = smov (!%p2028_p11, %s1711_s17), 7  ;;  %v359_v10 = vunpack.c.0.s8 %v358_v8  ;;  %v370_v31 = vld [vmem:[%s3016_s4 + $0x8] sm:$0xff]  ;;  %v2098_v33 = vsub.s32 0, %v2046_v11  ;;  %v2102_v35 = vsub.s32 1, %v2046_v11  ;;  %v2105_v36 = vsub.s32 2, %v2046_v11  ;;  %v371_v37 = vld [vmem:[%s3016_s4 + $0x10] sm:$0xff] }
  0x1b   : > { %s1658_s22 = sshll.u32 %s316_s21, 1  ;;  %s3034_s17 = smov (!%p2028_p11, %s3032_s17), 7  ;;  %v383_v19 = vunpack.c.0.s8 %v382_v17  ;;  %v503_v56 = vsub.s32 3, %v2046_v11  ;;  %vm885_vm1 = vcmask 1031168  }
  0x1c   : > { %490 = vperm.xlu0 %1763, %v2019_v4   ;;  %1765 = vset.pattern.permute.xlu1 %v1905_v5  ;;  %s2052_s30 = scalar_lea.vmem %s3012_s0, %s1658_s22  ;;  %s1671_s12 = sshll.u32 %s3034_s17, 1  ;;  %v2060_v14 = vsub.s32 %v359_v10, %v2046_v11 }
  0x1d   : > { %744 = vperm.xlu1 %1765, %v2007_v1   ;;  %v1841_v15 = vld.sshfl [vmem:[%s2052_s30] sm:$0x33 pattern:$0x76325410]  ;;  %s349_s13 = scalar_select %p196_p2, 0.0, 1.0  ;;  %v2078_v25 = vsub.s32 %v383_v19, %v2046_v11 }
  0x1e   : > { %3023 = vst [vmem:[#allocation6_spill] sm:$0xff] %v2060_v14  ;;  %s339_s18 = scalar_lea.vmem %s3014_s2, %s1671_s12  ;;  %v364_v23 = vcombine.high %v1841_v15, %v1841_v15  ;;  %s1660_s15 = sadd.s32 4294967295, %s2022_s16 }
  0x1f   : > { %v353_v20 = vld [vmem:[%s339_s18] sm:$0x3]  ;;  %v354_v21 = vstv %s349_s13  ;;  %p322_p12 = scmp.gt.s32.totalorder %s1660_s15, 0  ;;  %p1661_p13 = scmp.lt.s32.totalorder %s1660_s15, 7 }
  0x20   : > { %1766 = vset.pattern.permute.xlu0 %v1905_v5  ;;  %v355_v24 = vmul.f32 %v354_v21, %v353_v20  ;;  %v712_v27 = vcombine.low %v1841_v15, %v364_v23  ;;  %p346_p0 = scmp.eq.s32.totalorder %s1975_s5, 0  ;;  %s1910_s16 = smov 127  }
  0x21   : > { %748 = vperm.xlu0 %1766, %v2019_v4   ;;  %1767 = vset.pattern.permute.xlu1 %v1904_v3  ;;  %s3036_s15 = smov (!%p322_p12, %s1660_s15), 0  ;;  %s1911_s22 = smov 126  }
  0x22   : > { %498 = vperm.xlu1 %1767, %v2036_v6   ;;  %v2084_v28 = vrot.slane %v355_v24, %v2078_v25  ;;  %v2090_v30 = vrot.slane %v712_v27, %v2078_v25  ;;  %s3038_s15 = smov (!%p1661_p13, %s3036_s15), 7  ;;  %v380_v45 = vcombine.low %v364_v23, %v355_v24  ;;  %s1914_s10 = smov 2  }
  0x23   : > { %s1666_s18 = sshll.u32 %s3038_s15, 1  ;;  %s311_s11 = sand.u32 1, %s1894_s24  }
  0x24   : > { %v727_v32 = vcombine.low %v2090_v30, %v2084_v28  ;;  %s347_s19 = scalar_select %p346_p0, 0.0, 1.0  ;;  %v394_v48 = vrot.slane %v380_v45, %v2078_v25 }
  0x25   : > { %756 = vperm.xlu0 %1766, %v2036_v6   ;;  %s327_s21 = scalar_lea.vmem %s3013_s1, %s1666_s18  ;;  %s1656_s12 = sshll.u32 %s311_s11, 2 }
  0x26   : > { %1768 = vset.pattern.permute.xlu1 %v1905_v5  ;;  %v735_v34 = vrot.slane %v727_v32, %v2078_v25  ;;  %v350_v41 = vld [vmem:[%s327_s21] sm:$0x3]  ;;  %v351_v42 = vstv %s347_s19  ;;  %s1712_s13 = sshll.u32 %s1975_s5, 6  ;;  %s313_s14 = scalar_lea.vmem [#allocation3], %s1656_s12 }
  0x27   : > { %752 = vperm.xlu1 %1768, %v2012_v2   ;;  %v352_v43 = vmul.f32 %v351_v42, %v350_v41  ;;  %s1563_s15 = sshll.u32 %s313_s14, 4  ;;  %s1561_s20 = scalar_lea.hbm %s3018_s6, %s1712_s13  ;;  %s1564_s15 = int_to_ptr.vmem [resolvable:$true] %s1563_s15 }
  0x28   : > { %v2111_v38 = vrot.slane %v735_v34, %v2098_v33  ;;  %v2114_v39 = vrot.slane %v735_v34, %v2102_v35  ;;  %v2117_v40 = vrot.slane %v735_v34, %v2105_v36  ;;  %s1549_s17 = scalar_lea.sflag [#allocation4], %s311_s11  ;;  %s1842_s21 = scalar_lea.vmem %s1564_s15, 64 }
  0x29   : > { %1770 = vset.pattern.permute.xlu0 %v1907_v12  ;;  %v379_v44 = vcombine.low %v352_v43, %v1841_v15  ;;  %p1843_p1 = scmp.ne.s32.totalorder %s1564_s15, %s1842_s21 }
  0x2a   : > { %418 = vperm.xlu0 %1770, %v2019_v4  }
  0x2b   : > { %1769 = vset.pattern.permute.xlu1 %v1907_v12  ;;  %v387_v47 = vrot.slane %v379_v44, %v2078_v25  ;;  %p1844_p2 = pnand %p1843_p1, %p1994_p5 }
  0x2c   : > { %413 = vperm.xlu1 %1769, %v2007_v1  }
  0x2d   : > { %v396_v49 = vcombine.high %v387_v47, %v394_v48  ;;  %v395_v59 = vcombine.low %v387_v47, %v394_v48  ;;  %p1845_p3 = pneg %p1844_p2 }
  0x2e   : > { %972 = vperm.xlu0 %1770, %v373_v13  }
  0x2f   : > { %v410_v50 = vrot.slane %v396_v49, %v2078_v25  ;;  %v403_v7 = vrot.slane %v395_v59, %v2078_v25 }
  0x30   : > { %423 = vperm.xlu1 %1769, %v2012_v2  }
  0x31   : > { %v2129_v51 = vrot.slane %v410_v50, %v2102_v35  ;;  %v2132_v52 = vrot.slane %v410_v50, %v2098_v33  ;;  %v2151_v62 = vrot.slane %v410_v50, %v503_v56  ;;  %v2154_v63 = vrot.slane %v410_v50, %v2105_v36 }
  0x32   : > { %952 = vperm.xlu0 %1770, %v369_v18   ;;  %v2176_v13 = vrot.slane %v403_v7, %v2102_v35  ;;  %v2179_v15 = vrot.slane %v403_v7, %v2098_v33  ;;  %v2194_v21 = vrot.slane %v403_v7, %v2105_v36  ;;  %v2242_v49 = vrot.slane %v403_v7, %v503_v56 }
  0x33   : > { %v728_v56 = vcombine.high %v2090_v30, %v2084_v28 }
  0x34   : > { %428 = vperm.xlu1 %1769, %v2036_v6  }
  0x36   : > { %982 = vperm.xlu0 %1770, %v375_v22  }
  0x38   : > { %977 = vperm.xlu1 %1769, %v374_v26  }
  0x3a   : > { %987 = vperm.xlu0 %1770, %v376_v29  }
  0x3c   : > { %957 = vperm.xlu1 %1769, %v370_v31  }
  0x40   : > { %962 = vperm.xlu1 %1769, %v371_v37  }
  0x44   : > { %1772 = vset.pattern.permute.xlu1 %v1909_v46 }
  0x93   : > { %v2134_v53 = vpop.permute.xlu0 %486  ;;  %v2143_v57 = vpop.permute.xlu1 %494 }
  0x94   : > { %v528_v54 = vmul.f32 %v2134_v53, %v2129_v51  ;;  %v527_v55 = vmul.f32 %v2134_v53, %v2132_v52  ;;  %v530_v3 = vmul.f32 %v2151_v62, %v2134_v53  ;;  %v529_v5 = vmul.f32 %v2134_v53, %v2154_v63 }
  0x95   : > { %v512_v18 = vmul.f32 %v2134_v53, %v2176_v13  ;;  %v511_v19 = vmul.f32 %v2134_v53, %v2179_v15  ;;  %v536_v47 = vmul.f32 %v2143_v57, %v2129_v51  ;;  %v535_v48 = vmul.f32 %v2143_v57, %v2132_v52 }
  0x96   : > { %609 = vrot.lane.b32.xlu1 %v528_v54, %s1910_s16  ;;  %607 = vrot.lane.b32.xlu0 %v527_v55, %s1910_s16  ;;  %v514_v7 = vmul.f32 %v2242_v49, %v2134_v53 }
  0x97   : > { %v2145_v58 = vpop.permute.xlu0 %490 }
  0x98   : > { %v532_v60 = vmul.f32 %v2145_v58, %v2129_v51  ;;  %v531_v61 = vmul.f32 %v2145_v58, %v2132_v52  ;;  %v2158_v0 = vpop.permute.xlu1 %744  ;;  %v534_v10 = vmul.f32 %v2151_v62, %v2145_v58  ;;  %v533_v11 = vmul.f32 %v2145_v58, %v2154_v63 }
  0x99   : > { %v516_v20 = vmul.f32 %v2145_v58, %v2176_v13  ;;  %v515_v27 = vmul.f32 %v2145_v58, %v2179_v15 }
  0x9a   : > { %617 = vrot.lane.b32.xlu1 %v532_v60, %s1910_s16  ;;  %615 = vrot.lane.b32.xlu0 %v531_v61, %s1910_s16 }
  0x9c   : > { %v2165_v8 = vpop.permute.xlu0 %748 }
  0x9d   : > { %v2169_v9 = vpop.permute.xlu1 %498 }
  0x9e   : > { %613 = vrot.lane.b32.xlu1 %v530_v3, %s1910_s16  ;;  %611 = vrot.lane.b32.xlu0 %v529_v5, %s1910_s16  ;;  %v513_v5 = vmul.f32 %v2134_v53, %v2194_v21  ;;  %v742_v53 = vrot.slane %v728_v56, %v2078_v25  ;;  %v538_v25 = vmul.f32 %v2151_v62, %v2143_v57 }
  0xa0   : > { %v2181_v16 = vpop.permute.xlu0 %756 }
  0xa2   : > { %621 = vrot.lane.b32.xlu1 %v534_v10, %s1910_s16  ;;  %619 = vrot.lane.b32.xlu0 %v533_v11, %s1910_s16  ;;  %v2185_v17 = vpop.permute.xlu1 %752 }
  0xa5   : > { %v419_v22 = vpop.permute.xlu0 %418 }
  0xa6   : > { %577 = vrot.lane.b32.xlu1 %v512_v18, %s1910_s16  ;;  %575 = vrot.lane.b32.xlu0 %v511_v19, %s1910_s16  ;;  %v2199_v23 = vmul.f32 %v2132_v52, %v419_v22  ;;  %v2202_v24 = vmul.f32 %v2129_v51, %v419_v22  ;;  %v2205_v26 = vmul.f32 %v2154_v63, %v419_v22 }
  0xa7   : > { %v414_v29 = vpop.permute.xlu1 %413  ;;  %v2210_v31 = vmul.f32 %v2179_v15, %v419_v22  ;;  %v2213_v32 = vmul.f32 %v2176_v13, %v419_v22  ;;  %v2216_v34 = vmul.f32 %v2194_v21, %v419_v22  ;;  %v517_v22 = vmul.f32 %v2145_v58, %v2194_v21 }
  0xa8   : > { %v2219_v37 = vmul.f32 %v2132_v52, %v414_v29  ;;  %v2222_v41 = vmul.f32 %v2129_v51, %v414_v29  ;;  %v2225_v42 = vmul.f32 %v2154_v63, %v414_v29  ;;  %v2228_v43 = vmul.f32 %v2179_v15, %v414_v29 }
  0xa9   : > { %v2231_v44 = vmul.f32 %v2176_v13, %v414_v29  ;;  %v2234_v45 = vmul.f32 %v2194_v21, %v414_v29  ;;  %v2298_v29 = vrot.slane %v742_v53, %v2098_v33 }
  0xaa   : > { %585 = vrot.lane.b32.xlu1 %v516_v20, %s1910_s16  ;;  %583 = vrot.lane.b32.xlu0 %v515_v27, %s1910_s16  ;;  %v518_v27 = vmul.f32 %v2242_v49, %v2145_v58 }
  0xab   : > { %v424_v50 = vpop.permute.xlu1 %423  ;;  %v801_v58 = vmul.f32 %v2298_v29, %v2158_v0 }
  0xac   : > { %v2245_v54 = vmul.f32 %v2132_v52, %v424_v50  ;;  %v2248_v55 = vmul.f32 %v2129_v51, %v424_v50  ;;  %v2251_v59 = vmul.f32 %v2154_v63, %v424_v50  ;;  %v2254_v60 = vmul.f32 %v2179_v15, %v424_v50 }
  0xad   : > { %v2257_v61 = vmul.f32 %v2176_v13, %v424_v50  ;;  %v2260_v3 = vmul.f32 %v2194_v21, %v424_v50  ;;  %v2314_v50 = vrot.slane %v742_v53, %v2105_v36 }
  0xae   : > { %625 = vrot.lane.b32.xlu1 %v536_v47, %s1910_s16  ;;  %623 = vrot.lane.b32.xlu0 %v535_v48, %s1910_s16  ;;  %v2301_v47 = vrot.slane %v742_v53, %v2102_v35  ;;  %v537_v48 = vmul.f32 %v2143_v57, %v2154_v63  ;;  %v804_v35 = vmul.f32 %v2298_v29, %v2165_v8 }
  0xaf   : > { %v429_v10 = vpop.permute.xlu1 %428  ;;  %v803_v56 = vmul.f32 %v2314_v50, %v2158_v0  ;;  %v806_v36 = vmul.f32 %v2314_v50, %v2165_v8  ;;  %v539_v53 = vmul.f32 %v2169_v9, %v2132_v52 }
  0xb0   : > { %v2271_v11 = vmul.f32 %v2132_v52, %v429_v10  ;;  %v2274_v18 = vmul.f32 %v2129_v51, %v429_v10  ;;  %v2277_v19 = vmul.f32 %v2154_v63, %v429_v10  ;;  %v2280_v20 = vmul.f32 %v2179_v15, %v429_v10 }
  0xb1   : > { %v2283_v28 = vmul.f32 %v2176_v13, %v429_v10  ;;  %v2286_v30 = vmul.f32 %v2194_v21, %v429_v10  ;;  %v802_v33 = vmul.f32 %v2301_v47, %v2158_v0  ;;  %v520_v10 = vmul.f32 %v2143_v57, %v2176_v13 }
  0xb2   : > { %579 = vrot.lane.b32.xlu1 %v513_v5, %s1910_s16  ;;  %581 = vrot.lane.b32.xlu0 %v514_v7, %s1910_s16  ;;  %v805_v5 = vmul.f32 %v2301_v47, %v2165_v8  ;;  %v519_v7 = vmul.f32 %v2143_v57, %v2179_v15  ;;  %v541_v52 = vmul.f32 %v2169_v9, %v2154_v63 }
  0xb3   : > { %v791_v63 = vmul.f32 %v2117_v40, %v2158_v0 }
  0xb6   : > { %587 = vrot.lane.b32.xlu1 %v517_v22, %s1910_s16  ;;  %589 = vrot.lane.b32.xlu0 %v518_v27, %s1910_s16  ;;  %v540_v22 = vmul.f32 %v2169_v9, %v2129_v51  ;;  %v521_v27 = vmul.f32 %v2143_v57, %v2194_v21  ;;  %v542_v51 = vmul.f32 %v2151_v62, %v2169_v9 }
  0xb7   : > { %v792_v62 = vmul.f32 %v2111_v38, %v2165_v8 }
  0xba   : > { %627 = vrot.lane.b32.xlu1 %v537_v48, %s1910_s16  ;;  %629 = vrot.lane.b32.xlu0 %v538_v25, %s1910_s16  ;;  %v522_v48 = vmul.f32 %v2242_v49, %v2143_v57  ;;  %v789_v25 = vmul.f32 %v2111_v38, %v2158_v0  ;;  %v790_v57 = vmul.f32 %v2114_v39, %v2158_v0 }
  0xbb   : > { %v807_v0 = vmul.f32 %v2298_v29, %v2185_v17 }
  0xbe   : > { %861 = vrot.lane.b32.xlu1 %v801_v58, %s1911_s22  ;;  %863 = vrot.lane.b32.xlu0 %v802_v33, %s1911_s22  ;;  %v793_v58 = vmul.f32 %v2114_v39, %v2165_v8  ;;  %v794_v33 = vmul.f32 %v2117_v40, %v2165_v8  ;;  %v523_v8 = vmul.f32 %v2169_v9, %v2179_v15 }
  0xbf   : > { %v526_v15 = vmul.f32 %v2242_v49, %v2169_v9  ;;  %v797_v49 = vmul.f32 %v2117_v40, %v2185_v17 }
  0xc2   : > { %865 = vrot.lane.b32.xlu1 %v803_v56, %s1911_s22  ;;  %867 = vrot.lane.b32.xlu0 %v804_v35, %s1911_s22  ;;  %v808_v35 = vmul.f32 %v2301_v47, %v2185_v17  ;;  %v809_v56 = vmul.f32 %v2314_v50, %v2185_v17 }
  0xc6   : > { %869 = vrot.lane.b32.xlu1 %v805_v5, %s1911_s22  ;;  %871 = vrot.lane.b32.xlu0 %v806_v36, %s1911_s22  ;;  %v372_v5 = vld [vmem:[%s3016_s4 + $0x18] sm:$0xff]  ;;  %v524_v36 = vmul.f32 %v2169_v9, %v2176_v13  ;;  %v795_v13 = vmul.f32 %v2111_v38, %v2185_v17 }
  0xca   : > { %591 = vrot.lane.b32.xlu1 %v519_v7, %s1910_s16  ;;  %593 = vrot.lane.b32.xlu0 %v520_v10, %s1910_s16  ;;  %v525_v7 = vmul.f32 %v2169_v9, %v2194_v21  ;;  %v2396_v10 = vpop.permute.xlu0 %972  ;;  %v2405_v21 = vpop.permute.xlu1 %977 }
  0xce   : > { %631 = vrot.lane.b32.xlu1 %v539_v53, %s1910_s16  ;;  %633 = vrot.lane.b32.xlu0 %v540_v22, %s1910_s16  ;;  %v796_v53 = vmul.f32 %v2114_v39, %v2185_v17  ;;  %v2407_v9 = vpop.permute.xlu0 %952  ;;  %v810_v22 = vmul.f32 %v2298_v29, %v2181_v16  ;;  %v798_v17 = vmul.f32 %v2111_v38, %v2181_v16 }
  0xcf   : > { %v799_v29 = vmul.f32 %v2114_v39, %v2181_v16 }
  0xd2   : > { %595 = vrot.lane.b32.xlu1 %v521_v27, %s1910_s16  ;;  %597 = vrot.lane.b32.xlu0 %v522_v48, %s1910_s16  ;;  %v811_v27 = vmul.f32 %v2301_v47, %v2181_v16  ;;  %v812_v48 = vmul.f32 %v2314_v50, %v2181_v16 }
  0xd6   : > { %635 = vrot.lane.b32.xlu1 %v541_v52, %s1910_s16  ;;  %637 = vrot.lane.b32.xlu0 %v542_v51, %s1910_s16  ;;  %v2419_v52 = vpop.permute.xlu1 %957  ;;  %v2421_v51 = vpop.permute.xlu0 %982 }
  0xda   : > { %837 = vrot.lane.b32.xlu1 %v789_v25, %s1911_s22  ;;  %839 = vrot.lane.b32.xlu0 %v790_v57, %s1911_s22  ;;  %v2431_v47 = vpop.permute.xlu1 %962  ;;  %v2433_v50 = vpop.permute.xlu0 %987  ;;  %v800_v25 = vmul.f32 %v2117_v40, %v2181_v16 }
  0xde   : > { %841 = vrot.lane.b32.xlu1 %v791_v63, %s1911_s22  ;;  %843 = vrot.lane.b32.xlu0 %v792_v62, %s1911_s22  ;;  %v1912_v62 = vmov 5  }
  0xe2   : > { %845 = vrot.lane.b32.xlu1 %v793_v58, %s1911_s22  ;;  %847 = vrot.lane.b32.xlu0 %v794_v33, %s1911_s22 }
  0xe6   : > { %873 = vrot.lane.b32.xlu1 %v807_v0, %s1911_s22  ;;  %875 = vrot.lane.b32.xlu0 %v808_v35, %s1911_s22 }
  0xea   : > { %877 = vrot.lane.b32.xlu1 %v809_v56, %s1911_s22  ;;  %599 = vrot.lane.b32.xlu0 %v523_v8, %s1910_s16 }
  0xee   : > { %601 = vrot.lane.b32.xlu1 %v524_v36, %s1910_s16  ;;  %967 = vperm.xlu0 %1770, %v372_v5  }
  0xf2   : > { %603 = vrot.lane.b32.xlu1 %v525_v7, %s1910_s16  ;;  %605 = vrot.lane.b32.xlu0 %v526_v15, %s1910_s16 }
  0xf3   : > { %1771 = vset.pattern.permute.xlu0 %v1909_v46 }
  0xf6   : > { %849 = vrot.lane.b32.xlu1 %v795_v13, %s1911_s22  ;;  %851 = vrot.lane.b32.xlu0 %v796_v53, %s1911_s22 }
  0xfa   : > { %853 = vrot.lane.b32.xlu1 %v797_v49, %s1911_s22  ;;  %879 = vrot.lane.b32.xlu0 %v810_v22, %s1911_s22 }
  0xfe   : > { %881 = vrot.lane.b32.xlu1 %v811_v27, %s1911_s22  ;;  %883 = vrot.lane.b32.xlu0 %v812_v48, %s1911_s22  ;;  %v1696_v27 = vld [vmem:[#allocation2] ss:$0 sm:$0xff] }
 0x102   : > { %855 = vrot.lane.b32.xlu1 %v798_v17, %s1911_s22  ;;  %857 = vrot.lane.b32.xlu0 %v799_v29, %s1911_s22 }
 0x106   : > { %859 = vrot.lane.b32.xlu1 %v800_v25, %s1911_s22  ;;  %1238 = vperm.xlu0 %1771, %v2007_v1  }
 0x108   : > { %v610_v38 = vpop.permute.xlu1 %609  ;;  %v608_v57 = vpop.permute.xlu0 %607 }
 0x109   : > { %v652_v39 = vsel %vm639_vm0, %v608_v57, %v610_v38 }
 0x10a   : > { %v2441_v63 = vadd.f32 %v652_v39, %v2219_v37  ;;  %1242 = vperm.xlu1 %1772, %v2019_v4   ;;  %1773 = vset.pattern.permute.xlu0 %v1912_v62 }
 0x10b   : > { %1374 = vperm.xlu0 %1773, %v2007_v1  }
 0x10c   : > { %v618_v58 = vpop.permute.xlu1 %617  ;;  %v616_v40 = vpop.permute.xlu0 %615 }
 0x10d   : > { %v655_v16 = vsel %vm639_vm0, %v616_v40, %v618_v58 }
 0x10e   : > { %v2447_v33 = vadd.f32 %v655_v16, %v2199_v23  ;;  %1246 = vperm.xlu1 %1772, %v2012_v2   ;;  %v1913_v23 = vmov 3  }
 0x10f   : > { %1382 = vperm.xlu0 %1773, %v2012_v2  }
 0x110   : > { %v614_v0 = vpop.permute.xlu1 %613  ;;  %v612_v37 = vpop.permute.xlu0 %611 }
 0x111   : > { %v653_v35 = vsel %vm639_vm0, %v610_v38, %v612_v37  ;;  %v654_v56 = vsel %vm639_vm0, %v612_v37, %v614_v0 }
 0x112   : > { %v701_v8 = vadd.f32 %v653_v35, %v2222_v41  ;;  %v2455_v5 = vadd.f32 %v654_v56, %v2225_v42  ;;  %1774 = vset.pattern.permute.xlu1 %v1912_v62 }
 0x113   : > { %1378 = vperm.xlu1 %1774, %v2019_v4   ;;  %1777 = vset.pattern.permute.xlu0 %v1913_v23 }
 0x114   : > { %v622_v36 = vpop.permute.xlu1 %621  ;;  %v620_v7 = vpop.permute.xlu0 %619  ;;  %1135 = vperm.xlu0 %1777, %v2007_v1  }
 0x115   : > { %v656_v15 = vsel %vm639_vm0, %v618_v58, %v620_v7  ;;  %v657_v13 = vsel %vm639_vm0, %v620_v7, %v622_v36 }
 0x116   : > { %v2462_v53 = vadd.f32 %v656_v15, %v2202_v24  ;;  %v2465_v41 = vadd.f32 %v657_v13, %v2205_v26 }
 0x117   : > { %1775 = vset.pattern.permute.xlu1 %v1909_v46 }
 0x118   : > { %v578_v42 = vpop.permute.xlu1 %577  ;;  %1250 = vperm.xlu1 %1775, %v2036_v6   ;;  %1147 = vperm.xlu0 %1777, %v2036_v6   ;;  %v576_v49 = vpop.permute.xlu0 %575 }
 0x119   : > { %v640_v1 = vsel %vm639_vm0, %v576_v49, %v578_v42 }
 0x11a   : > { %v2472_v22 = vadd.f32 %v640_v1, %v2228_v43 }
 0x11c   : > { %v586_v48 = vpop.permute.xlu1 %585  ;;  %1776 = vset.pattern.permute.xlu1 %v1912_v62  ;;  %v584_v24 = vpop.permute.xlu0 %583  ;;  %1779 = vset.pattern.permute.xlu0 %v1907_v12 }
 0x11d   : > { %v643_v26 = vsel %vm639_vm0, %v584_v24, %v586_v48  ;;  %1386 = vperm.xlu1 %1776, %v2036_v6   ;;  %1474 = vperm.xlu0 %1779, %v1696_v27  }
 0x11e   : > { %v2478_v46 = vadd.f32 %v643_v26, %v2210_v31 }
 0x120   : > { %v626_v17 = vpop.permute.xlu1 %625  ;;  %v624_v29 = vpop.permute.xlu0 %623 }
 0x121   : > { %v658_v25 = vsel %vm639_vm0, %v624_v29, %v626_v17  ;;  %1778 = vset.pattern.permute.xlu1 %v1913_v23 }
 0x122   : > { %v2482_v43 = vadd.f32 %v658_v25, %v2245_v54  ;;  %1139 = vperm.xlu1 %1778, %v2019_v4  }
 0x124   : > { %v580_v38 = vpop.permute.xlu1 %579  ;;  %v582_v12 = vpop.permute.xlu0 %581 }
 0x125   : > { %v641_v57 = vsel %vm639_vm0, %v578_v42, %v580_v38  ;;  %v642_v6 = vsel %vm639_vm0, %v580_v38, %v582_v12 }
 0x126   : > { %v2488_v39 = vadd.f32 %v641_v57, %v2231_v44  ;;  %v2491_v31 = vadd.f32 %v642_v6, %v2234_v45  ;;  %1143 = vperm.xlu1 %1778, %v2012_v2  }
 0x128   : > { %v588_v62 = vpop.permute.xlu1 %587  ;;  %v590_v58 = vpop.permute.xlu0 %589 }
 0x129   : > { %v644_v54 = vsel %vm639_vm0, %v586_v48, %v588_v62  ;;  %v645_v4 = vsel %vm639_vm0, %v588_v62, %v590_v58 }
 0x12a   : > { %v2497_v40 = vadd.f32 %v644_v54, %v2213_v32  ;;  %v2500_v16 = vadd.f32 %v645_v4, %v2216_v34 }
 0x12c   : > { %v628_v0 = vpop.permute.xlu1 %627  ;;  %v630_v44 = vpop.permute.xlu0 %629 }
 0x12d   : > { %v659_v37 = vsel %vm639_vm0, %v626_v17, %v628_v0  ;;  %v660_v45 = vsel %vm639_vm0, %v628_v0, %v630_v44 }
 0x12e   : > { %v2505_v2 = vadd.f32 %v659_v37, %v2248_v55  ;;  %v2508_v35 = vadd.f32 %v660_v45, %v2251_v59 }
 0x130   : > { %v862_v56 = vpop.permute.xlu1 %861  ;;  %v864_v23 = vpop.permute.xlu0 %863 }
 0x131   : > { %v938_v32 = vadd.f32 %v862_v56, %v2441_v63  ;;  %v894_v34 = vsel %vm885_vm1, %v862_v56, %v864_v23 }
 0x132   : > { %v939_v36 = vadd.f32 %v894_v34, %v701_v8 }
 0x134   : > { %v866_v7 = vpop.permute.xlu1 %865  ;;  %v868_v15 = vpop.permute.xlu0 %867  ;;  %v2542_v0 = vadd.f32 %v2396_v10, %v939_v36 }
 0x135   : > { %v941_v13 = vadd.f32 %v868_v15, %v2447_v33  ;;  %v895_v38 = vsel %vm885_vm1, %v864_v23, %v866_v7 }
 0x136   : > { %v940_v58 = vadd.f32 %v895_v38, %v2455_v5  ;;  %v1064_v5 = vmul.f32 1.442695, %v2542_v0  ;;  %vm1027_vm3 = vcmp.gt.f32.partialorder %v2542_v0, 0.0 }
 0x137   : > { %v2546_v37 = vadd.f32 %v2405_v21, %v941_v13 }
 0x138   : > { %v870_v42 = vpop.permute.xlu1 %869  ;;  %v872_v49 = vpop.permute.xlu0 %871  ;;  %v2549_v23 = vadd.f32 %v2396_v10, %v940_v58 }
 0x139   : > { %v896_v57 = vsel %vm885_vm1, %v868_v15, %v870_v42  ;;  %v897_v6 = vsel %vm885_vm1, %v870_v42, %v872_v49  ;;  %vm1029_vm4 = vcmp.gt.f32.partialorder %v2546_v37, 0.0 }
 0x13a   : > { %v942_v54 = vadd.f32 %v896_v57, %v2462_v53  ;;  %v943_v44 = vadd.f32 %v897_v6, %v2465_v41  ;;  %v1068_v41 = vmul.f32 1.442695, %v2546_v37  ;;  %v1066_v15 = vmul.f32 1.442695, %v2549_v23 }
 0x13b   : > { %vm1028_vm5 = vcmp.gt.f32.partialorder %v2549_v23, 0.0 }
 0x13c   : > { %v592_v1 = vpop.permute.xlu1 %591  ;;  %v2513_v55 = vpop.permute.xlu0 %593  ;;  %v2556_v53 = vadd.f32 %v2405_v21, %v943_v44 }
 0x13d   : > { %v646_v59 = vsel %vm639_vm0, %v592_v1, %v2513_v55 }
 0x13e   : > { %v2518_v27 = vadd.f32 %v646_v59, %v2254_v60  ;;  %v2534_v60 = vadd.f32 %v2396_v10, %v938_v32  ;;  %v2552_v32 = vadd.f32 %v2405_v21, %v942_v54  ;;  %v1072_v21 = vmul.f32 1.442695, %v2556_v53 }
 0x13f   : > { %vm1031_vm7 = vcmp.gt.f32.partialorder %v2556_v53, 0.0 }
 0x140   : > { %v2520_v48 = vpop.permute.xlu1 %631  ;;  %v2522_v63 = vpop.permute.xlu0 %633  ;;  %v1062_v4 = vmul.f32 1.442695, %v2534_v60  ;;  %v1070_v13 = vmul.f32 1.442695, %v2552_v32  ;;  %vm1026_vm2 = vcmp.gt.f32.partialorder %v2534_v60, 0.0  ;;  %vm1030_vm6 = vcmp.gt.f32.partialorder %v2552_v32, 0.0 }
 0x142   : > { %1780 = vpow2.f32 %v1062_v4 }
 0x143   : > { %1782 = vpow2.f32 %v1064_v5 }
 0x144   : > { %v2524_v8 = vpop.permute.xlu1 %595  ;;  %v2526_v24 = vpop.permute.xlu0 %597  ;;  %1784 = vpow2.f32 %v1068_v41 }
 0x145   : > { %1786 = vpow2.f32 %v1066_v15  ;;  %v661_v15 = vsel %vm639_vm0, %v2520_v48, %v2522_v63  ;;  %v648_v48 = vsel %vm639_vm0, %v2524_v8, %v2526_v24 }
 0x146   : > { %1788 = vpow2.f32 %v1070_v13 }
 0x147   : > { %1790 = vpow2.f32 %v1072_v21 }
 0x148   : > { %v2528_v33 = vpop.permute.xlu1 %635  ;;  %v2530_v26 = vpop.permute.xlu0 %637 }
 0x14c   : > { %v838_v17 = vpop.permute.xlu1 %837  ;;  %v840_v29 = vpop.permute.xlu0 %839 }
 0x14d   : > { %v886_v34 = vsel %vm885_vm1, %v838_v17, %v840_v29  ;;  %v926_v36 = vadd.f32 %v838_v17, %v2472_v22 }
 0x14e   : > { %v927_v42 = vadd.f32 %v886_v34, %v2488_v39 }
 0x14f   : > { %v2570_v22 = vadd.f32 %v2407_v9, %v926_v36 }
 0x150   : > { %v842_v25 = vpop.permute.xlu1 %841  ;;  %v844_v12 = vpop.permute.xlu0 %843  ;;  %v2578_v57 = vadd.f32 %v2407_v9, %v927_v42 }
 0x151   : > { %v887_v10 = vsel %vm885_vm1, %v840_v29, %v842_v25  ;;  %v929_v59 = vadd.f32 %v844_v12, %v2478_v46  ;;  %vm1014_vm8 = vcmp.gt.f32.partialorder %v2570_v22, 0.0 }
 0x152   : > { %v928_v17 = vadd.f32 %v887_v10, %v2491_v31  ;;  %vm1015_vm9 = vcmp.gt.f32.partialorder %v2578_v57, 0.0 }
 0x153   : > { %v2583_v6 = vadd.f32 %v2419_v52, %v929_v59 }
 0x154   : > { %v846_v62 = vpop.permute.xlu1 %845  ;;  %v848_v45 = vpop.permute.xlu0 %847 }
 0x155   : > { %v888_v49 = vsel %vm885_vm1, %v844_v12, %v846_v62  ;;  %v889_v38 = vsel %vm885_vm1, %v846_v62, %v848_v45  ;;  %v1038_v62 = vmul.f32 1.442695, %v2570_v22  ;;  %v1040_v45 = vmul.f32 1.442695, %v2578_v57 }
 0x156   : > { %v930_v39 = vadd.f32 %v888_v49, %v2497_v40  ;;  %v931_v46 = vadd.f32 %v889_v38, %v2500_v16  ;;  %v2588_v40 = vadd.f32 %v2407_v9, %v928_v17  ;;  %v647_v49 = vsel %vm639_vm0, %v2513_v55, %v2524_v8 }
 0x157   : > { %1792 = vpow2.f32 %v1038_v62  ;;  %v709_v55 = vadd.f32 %v661_v15, %v2271_v11  ;;  %vm1017_vm11 = vcmp.gt.f32.partialorder %v2583_v6, 0.0 }
 0x158   : > { %v874_v56 = vpop.permute.xlu1 %873  ;;  %v876_v1 = vpop.permute.xlu0 %875  ;;  %v2594_v4 = vadd.f32 %v2419_v52, %v930_v39  ;;  %v2599_v5 = vadd.f32 %v2419_v52, %v931_v46  ;;  %1794 = vpow2.f32 %v1040_v45  ;;  %v696_v46 = vadd.f32 %v648_v48, %v2260_v3 }
 0x159   : > { %v898_v25 = vsel %vm885_vm1, %v874_v56, %v876_v1  ;;  %v944_v31 = vadd.f32 %v874_v56, %v2482_v43  ;;  %v1044_v43 = vmul.f32 1.442695, %v2583_v6  ;;  %v1781_v56 = vpop.eup %1780  ;;  %v663_v3 = vsel %vm639_vm0, %v2528_v33, %v2530_v26 }
 0x15a   : > { %v945_v58 = vadd.f32 %v898_v25, %v2505_v2  ;;  %v1042_v2 = vmul.f32 1.442695, %v2588_v40  ;;  %v1048_v10 = vmul.f32 1.442695, %v2599_v5  ;;  %v1684_v13 = vadd.f32 -1.0, %v1781_v56  ;;  %v1783_v42 = vpop.eup %1782 }
 0x15b   : > { %v2603_v9 = vadd.f32 %v2421_v51, %v944_v31  ;;  %1796 = vpow2.f32 %v1044_v43  ;;  %v1785_v59 = vpop.eup %1784  ;;  %v695_v25 = vadd.f32 %v647_v49, %v2257_v61  ;;  %v662_v61 = vsel %vm639_vm0, %v2522_v63, %v2528_v33 }
 0x15c   : > { %v878_v7 = vpop.permute.xlu1 %877  ;;  %v600_v44 = vpop.permute.xlu0 %599  ;;  %v2607_v34 = vadd.f32 %v2421_v51, %v945_v58  ;;  %1798 = vpow2.f32 %v1042_v2  ;;  %v2647_v62 = vsel %vm1026_vm2, %v2534_v60, %v1684_v13  ;;  %v1687_v58 = vadd.f32 -1.0, %v1785_v59 }
 0x15d   : > { %v899_v12 = vsel %vm885_vm1, %v876_v1, %v878_v7  ;;  %v1787_v39 = vpop.eup %1786  ;;  %v710_v33 = vadd.f32 %v662_v61, %v2274_v18  ;;  %v711_v26 = vadd.f32 %v663_v3, %v2277_v19  ;;  %vm1016_vm10 = vcmp.gt.f32.partialorder %v2588_v40, 0.0 }
 0x15e   : > { %v946_v16 = vadd.f32 %v899_v12, %v2508_v35  ;;  %v1046_v35 = vmul.f32 1.442695, %v2594_v4  ;;  %v1076_v1 = vmul.f32 1.442695, %v2607_v34  ;;  %v1789_v24 = vpop.eup %1788  ;;  %v1685_v12 = vadd.f32 -1.0, %v1783_v42 }
 0x15f   : > { %v1791_v31 = vpop.eup %1790  ;;  %v1686_v43 = vadd.f32 -1.0, %v1787_v39  ;;  %v1688_v2 = vadd.f32 -1.0, %v1789_v24  ;;  %v2663_v63 = vsel %vm1029_vm4, %v2546_v37, %v1687_v58  ;;  %vm1018_vm12 = vcmp.gt.f32.partialorder %v2594_v4, 0.0 }
 0x160   : > { %v2573_v29 = vpop.permute.xlu1 %601  ;;  %v2611_v36 = vadd.f32 %v2421_v51, %v946_v16  ;;  %v1074_v51 = vmul.f32 1.442695, %v2603_v9  ;;  %1800 = vpow2.f32 %v1046_v35  ;;  %v1689_v15 = vadd.f32 -1.0, %v1791_v31 }
 0x161   : > { %1802 = vpow2.f32 %v1048_v10  ;;  %v649_v11 = vsel %vm639_vm0, %v600_v44, %v2573_v29  ;;  %v2681_v18 = vsel %vm1028_vm5, %v2549_v23, %v1686_v43  ;;  %v2688_v49 = vsel %vm1030_vm6, %v2552_v32, %v1688_v2 }
 0x162   : > { %v1078_v38 = vmul.f32 1.442695, %v2611_v36  ;;  %1804 = vpow2.f32 %v1074_v51  ;;  %v697_v44 = vadd.f32 %v649_v11, %v2280_v20  ;;  %v2696_v23 = vsel %vm1031_vm7, %v2556_v53, %v1689_v15 }
 0x163   : > { %1806 = vpow2.f32 %v1076_v1  ;;  %vm1019_vm13 = vcmp.gt.f32.partialorder %v2599_v5, 0.0  ;;  %vm1032_vm14 = vcmp.gt.f32.partialorder %v2603_v9, 0.0  ;;  %vm1033_vm15 = vcmp.gt.f32.partialorder %v2607_v34, 0.0 }
 0x164   : > { %v2591_v54 = vpop.permute.xlu1 %603  ;;  %1808 = vpow2.f32 %v1078_v38  ;;  %v1793_v13 = vpop.eup %1792  ;;  %vm1174_vm2 = vcmask 1048560  }
 0x165   : > { %v1795_v48 = vpop.eup %1794  ;;  %v1672_v59 = vadd.f32 -1.0, %v1793_v13 }
 0x166   : > { %v1673_v11 = vadd.f32 -1.0, %v1795_v48 }
 0x167   : > { %v2723_v3 = vsel %vm1014_vm8, %v2570_v22, %v1672_v59 }
 0x168   : > { %v850_v41 = vpop.permute.xlu1 %849 }
 0x169   : > { %v932_v52 = vadd.f32 %v850_v41, %v2518_v27  ;;  %v2614_v7 = vpop.permute.xlu0 %967 }
 0x16b   : > { %v2625_v27 = vadd.f32 %v2431_v47, %v932_v52 }
 0x16c   : > { %v854_v21 = vpop.permute.xlu1 %853 }
 0x16d   : > { %v2637_v17 = vpop.permute.xlu0 %605  ;;  %v1050_v8 = vmul.f32 1.442695, %v2625_v27  ;;  %vm1020_vm4 = vcmp.gt.f32.partialorder %v2625_v27, 0.0 }
 0x16f   : > { %1810 = vpow2.f32 %v1050_v8  ;;  %v650_v8 = vsel %vm639_vm0, %v2573_v29, %v2591_v54 }
 0x170   : > { %v882_v16 = vpop.permute.xlu1 %881 }
 0x171   : > { %v852_v45 = vpop.permute.xlu0 %851 }
 0x172   : > { %v890_v60 = vsel %vm885_vm1, %v850_v41, %v852_v45  ;;  %v891_v56 = vsel %vm885_vm1, %v852_v45, %v854_v21  ;;  %v2670_v41 = vsel %vm1027_vm3, %v2542_v0, %v1685_v12  ;;  %v1797_v21 = vpop.eup %1796  ;;  %vm1034_vm3 = vcmp.gt.f32.partialorder %v2611_v36, 0.0 }
 0x173   : > { %v933_v35 = vadd.f32 %v890_v60, %v695_v25  ;;  %v934_v52 = vadd.f32 %v891_v56, %v696_v46  ;;  %v651_v25 = vsel %vm639_vm0, %v2591_v54, %v2637_v17  ;;  %v1675_v54 = vadd.f32 -1.0, %v1797_v21 }
 0x174   : > { %v856_v10 = vpop.permute.xlu1 %855  ;;  %v698_v17 = vadd.f32 %v650_v8, %v2283_v28  ;;  %v699_v60 = vadd.f32 %v651_v25, %v2286_v30 }
 0x175   : > { %v2673_v20 = vadd.f32 %v2431_v47, %v933_v35  ;;  %v2676_v51 = vadd.f32 %v2431_v47, %v934_v52  ;;  %v935_v42 = vadd.f32 %v856_v10, %v697_v44  ;;  %v880_v37 = vpop.permute.xlu0 %879 }
 0x176   : > { %v900_v19 = vsel %vm885_vm1, %v880_v37, %v882_v16  ;;  %v947_v0 = vadd.f32 %v880_v37, %v709_v55  ;;  %v1799_v55 = vpop.eup %1798  ;;  %v2740_v37 = vsel %vm1015_vm9, %v2578_v57, %v1673_v11 }
 0x177   : > { %v1052_v47 = vmul.f32 1.442695, %v2673_v20  ;;  %v1054_v1 = vmul.f32 1.442695, %v2676_v51  ;;  %v2699_v38 = vadd.f32 %v2614_v7, %v935_v42  ;;  %v948_v39 = vadd.f32 %v900_v19, %v710_v33  ;;  %v1801_v24 = vpop.eup %1800 }
 0x178   : > { %v2702_v32 = vadd.f32 %v2433_v50, %v947_v0  ;;  %v1803_v12 = vpop.eup %1802  ;;  %v1674_v2 = vadd.f32 -1.0, %v1799_v55  ;;  %v1676_v44 = vadd.f32 -1.0, %v1801_v24  ;;  %vm1021_vm5 = vcmp.gt.f32.partialorder %v2673_v20, 0.0 }
 0x179   : > { %1812 = vpow2.f32 %v1052_v47  ;;  %v884_v53 = vpop.permute.xlu0 %883  ;;  %v1056_v46 = vmul.f32 1.442695, %v2699_v38  ;;  %v2716_v31 = vadd.f32 %v2433_v50, %v948_v39  ;;  %v1805_v61 = vpop.eup %1804  ;;  %vm1022_vm6 = vcmp.gt.f32.partialorder %v2676_v51, 0.0 }
 0x17a   : > { %1814 = vpow2.f32 %v1054_v1  ;;  %v1080_v29 = vmul.f32 1.442695, %v2702_v32  ;;  %v901_v58 = vsel %vm885_vm1, %v882_v16, %v884_v53  ;;  %v1807_v43 = vpop.eup %1806  ;;  %v860_v16 = vpop.permute.xlu1 %859  ;;  %v1690_v13 = vadd.f32 -1.0, %v1805_v61 }
 0x17b   : > { %v949_v45 = vadd.f32 %v901_v58, %v711_v26  ;;  %1816 = vpow2.f32 %v1056_v46  ;;  %v1809_v35 = vpop.eup %1808  ;;  %v1082_v33 = vmul.f32 1.442695, %v2716_v31  ;;  %v1691_v48 = vadd.f32 -1.0, %v1807_v43 }
 0x17c   : > { %1818 = vpow2.f32 %v1080_v29  ;;  %v1811_v28 = vpop.eup %1810  ;;  %v1692_v47 = vadd.f32 -1.0, %v1809_v35  ;;  %v2751_v1 = vsel %vm1017_vm11, %v2583_v6, %v1675_v54  ;;  %v2756_v57 = vsel %vm1016_vm10, %v2588_v40, %v1674_v2 }
 0x17d   : > { %v858_v56 = vpop.permute.xlu0 %857  ;;  %v2730_v22 = vadd.f32 %v2433_v50, %v949_v45  ;;  %v1677_v50 = vadd.f32 -1.0, %v1803_v12  ;;  %v1678_v21 = vadd.f32 -1.0, %v1811_v28  ;;  %v2761_v59 = vsel %vm1018_vm12, %v2594_v4, %v1676_v44 }
 0x17e   : > { %v892_v52 = vsel %vm885_vm1, %v856_v10, %v858_v56  ;;  %v893_v15 = vsel %vm885_vm1, %v858_v56, %v860_v16  ;;  %1820 = vpow2.f32 %v1082_v33  ;;  %v2776_v4 = vsel %vm1032_vm14, %v2603_v9, %v1690_v13 }
 0x17f   : > { %v936_v30 = vadd.f32 %v892_v52, %v698_v17  ;;  %v937_v26 = vadd.f32 %v893_v15, %v699_v60  ;;  %v1084_v42 = vmul.f32 1.442695, %v2730_v22  ;;  %v2771_v40 = vsel %vm1019_vm13, %v2599_v5, %v1677_v50 }
 0x180   : > { %v2781_v53 = vsel %vm1033_vm15, %v2607_v34, %v1691_v48  ;;  %v2786_v24 = vsel %vm1034_vm3, %v2611_v36, %v1692_v47  ;;  %v2794_v34 = vsel %vm1020_vm4, %v2625_v27, %v1678_v21  ;;  %vm1023_vm7 = vcmp.gt.f32.partialorder %v2699_v38, 0.0 }
 0x181   : > { %v2743_v10 = vadd.f32 %v2614_v7, %v936_v30  ;;  %v2746_v19 = vadd.f32 %v2614_v7, %v937_v26  ;;  %v1239_v0 = vpop.permute.xlu0 %1238  ;;  %1822 = vpow2.f32 %v1084_v42  ;;  %vm1035_vm8 = vcmp.gt.f32.partialorder %v2702_v32, 0.0 }
 0x182   : > { %v1253_v55 = vmul.f32 %v1239_v0, %v2723_v3  ;;  %v1265_v6 = vmul.f32 %v1239_v0, %v2647_v62  ;;  %v1254_v29 = vmul.f32 %v1239_v0, %v2740_v37  ;;  %v1255_v27 = vmul.f32 %v1239_v0, %v2756_v57 }
 0x183   : > { %v1058_v7 = vmul.f32 1.442695, %v2743_v10  ;;  %v1060_v39 = vmul.f32 1.442695, %v2746_v19  ;;  %v1266_v43 = vmul.f32 %v1239_v0, %v2670_v41  ;;  %v1267_v56 = vmul.f32 %v1239_v0, %v2681_v18 }
 0x184   : > { %v1277_v36 = vsel %vm1174_vm2, %v1253_v55, 0.0  ;;  %v1308_v58 = vsel %vm1174_vm2, %v1265_v6, 0.0  ;;  %vm1036_vm9 = vcmp.gt.f32.partialorder %v2716_v31, 0.0  ;;  %vm1037_vm10 = vcmp.gt.f32.partialorder %v2730_v22, 0.0 }
 0x185   : > { %1824 = vpow2.f32 %v1058_v7  ;;  %v1243_v8 = vpop.permute.xlu1 %1242  ;;  %vm1024_vm11 = vcmp.gt.f32.partialorder %v2743_v10, 0.0  ;;  %vm1025_vm12 = vcmp.gt.f32.partialorder %v2746_v19, 0.0  ;;  %vm1536_vm13 = vcmask 1045509  }
 0x186   : > { %v1813_v25 = vpop.eup %1812  ;;  %1826 = vpow2.f32 %v1060_v39  ;;  %v1256_v5 = vmul.f32 %v1243_v8, %v2751_v1  ;;  %v1268_v9 = vmul.f32 %v1243_v8, %v2663_v63  ;;  %v1375_v46 = vpop.permute.xlu0 %1374  ;;  %v1257_v33 = vmul.f32 %v1243_v8, %v2761_v59 }
 0x187   : > { %v1815_v12 = vpop.eup %1814  ;;  %v1679_v54 = vadd.f32 -1.0, %v1813_v25  ;;  %v1258_v30 = vmul.f32 %v1243_v8, %v2771_v40  ;;  %v1269_v26 = vmul.f32 %v1243_v8, %v2688_v49  ;;  %v1389_v13 = vmul.f32 %v1375_v46, %v2740_v37 }
 0x188   : > { %v1278_v11 = vsel %vm1174_vm2, %v1256_v5, 0.0  ;;  %v1309_v61 = vsel %vm1174_vm2, %v1268_v9, 0.0  ;;  %v1817_v16 = vpop.eup %1816  ;;  %v1680_v35 = vadd.f32 -1.0, %v1815_v12  ;;  %v1390_v42 = vmul.f32 %v1375_v46, %v2756_v57 }
 0x189   : > { %v1279_v17 = vadd.f32 %v1278_v11, %v1277_v36  ;;  %v1310_v45 = vadd.f32 %v1309_v61, %v1308_v58  ;;  %v1247_v60 = vpop.permute.xlu1 %1246  ;;  %v1819_v15 = vpop.eup %1818  ;;  %v2812_v28 = vsel %vm1021_vm5, %v2673_v20, %v1679_v54  ;;  %v1681_v48 = vadd.f32 -1.0, %v1817_v16 }
 0x18a   : > { %v1259_v2 = vmul.f32 %v1247_v60, %v2794_v34  ;;  %v1271_v44 = vmul.f32 %v1247_v60, %v2776_v4  ;;  %v1383_v52 = vpop.permute.xlu0 %1382  ;;  %v1397_v47 = vmul.f32 %v1375_v46, %v2670_v41  ;;  %v1693_v7 = vadd.f32 -1.0, %v1819_v15 }
 0x18b   : > { %v1398_v39 = vmul.f32 %v1375_v46, %v2681_v18  ;;  %v2830_v55 = vsel %vm1022_vm6, %v2676_v51, %v1680_v35  ;;  %v2833_v6 = vmul.f32 %v1247_v60, %v2812_v28  ;;  %v1270_v5 = vmul.f32 %v1243_v8, %v2696_v23  ;;  %v1821_v46 = vpop.eup %1820 }
 0x18c   : > { %v1280_v50 = vsel %vm1174_vm2, %v1259_v2, 0.0  ;;  %v1311_v0 = vsel %vm1174_vm2, %v1271_v44, 0.0  ;;  %v2837_v9 = vadd.f32 %v1257_v33, %v1254_v29  ;;  %v2839_v12 = vadd.f32 %v1258_v30, %v1255_v27 }
 0x18d   : > { %v2822_v21 = vadd.f32 %v1280_v50, %v1279_v17  ;;  %v2824_v20 = vadd.f32 %v1311_v0, %v1310_v45  ;;  %v1321_v36 = vadd.f32 %v1269_v26, %v1266_v43  ;;  %v1119_v54 = vsel %vm1023_vm7, %v2699_v38, %v1681_v48 }
 0x18e   : > { %v1379_v25 = vpop.permute.xlu1 %1378  ;;  %v1823_v29 = vpop.eup %1822  ;;  %v1272_v17 = vmul.f32 %v1247_v60, %v2781_v53  ;;  %v1330_v45 = vadd.f32 %v1270_v5, %v1267_v56  ;;  %v1131_v33 = vsel %vm1035_vm8, %v2702_v32, %v1693_v7  ;;  %v1261_v30 = vmul.f32 %v1247_v60, %v2830_v55 }
 0x18f   : > { %v1136_v58 = vpop.permute.xlu0 %1135  ;;  %v1391_v51 = vmul.f32 %v1379_v25, %v2761_v59  ;;  %v1392_v11 = vmul.f32 %v1379_v25, %v2771_v40  ;;  %v1399_v61 = vmul.f32 %v1379_v25, %v2688_v49  ;;  %v1400_v8 = vmul.f32 %v1379_v25, %v2696_v23 }
 0x190   : > { %v1150_v27 = vmul.f32 %v1136_v58, %v2723_v3  ;;  %v1162_v26 = vmul.f32 %v1136_v58, %v2647_v62  ;;  %v1273_v3 = vmul.f32 %v1247_v60, %v2786_v24  ;;  %v1401_v50 = vmul.f32 %v1383_v52, %v2781_v53 }
 0x191   : > { %v1405_v16 = vadd.f32 %v1391_v51, %v1389_v13  ;;  %v1414_v2 = vadd.f32 %v1392_v11, %v1390_v42  ;;  %v1423_v44 = vadd.f32 %v1399_v61, %v1397_v47  ;;  %v1432_v35 = vadd.f32 %v1400_v8, %v1398_v39 }
 0x192   : > { %v1825_v43 = vpop.eup %1824  ;;  %v2859_v38 = vsel %vm1174_vm2, %v1150_v27, 0.0  ;;  %v1393_v13 = vmul.f32 %v1383_v52, %v2812_v28  ;;  %v1394_v42 = vmul.f32 %v1383_v52, %v2830_v55  ;;  %v2866_v0 = vsel %vm1174_vm2, %v1162_v26, 0.0 }
 0x193   : > { %v1827_v15 = vpop.eup %1826  ;;  %3024 = vst [vmem:[#allocation7_spill] sm:$0xff] %v2859_v38  ;;  %v1251_v56 = vpop.permute.xlu1 %1250  ;;  %v1682_v48 = vadd.f32 -1.0, %v1825_v43  ;;  %v1694_v7 = vadd.f32 -1.0, %v1821_v46  ;;  %v1402_v62 = vmul.f32 %v1383_v52, %v2786_v24  ;;  %v1151_v39 = vmul.f32 %v1136_v58, %v2740_v37 }
 0x194   : > { %v1148_v32 = vpop.permute.xlu0 %1147  ;;  %v1683_v47 = vadd.f32 -1.0, %v1827_v15  ;;  %v1695_v25 = vadd.f32 -1.0, %v1823_v29  ;;  %v1406_v5 = vadd.f32 %v1405_v16, %v1393_v13  ;;  %v2871_v60 = vmul.f32 %v1136_v58, %v2756_v57 }
 0x195   : > { %v1163_v51 = vmul.f32 %v1136_v58, %v2670_v41  ;;  %v2875_v11 = vmul.f32 %v1136_v58, %v2681_v18  ;;  %v1415_v61 = vadd.f32 %v1414_v2, %v1394_v42  ;;  %v1262_v8 = vmul.f32 %v1251_v56, %v1119_v54 }
 0x196   : > { %v1274_v27 = vmul.f32 %v1251_v56, %v1131_v33  ;;  %v2877_v43 = vmul.f32 %v1148_v32, %v1119_v54  ;;  %v1132_v37 = vsel %vm1036_vm9, %v2716_v31, %v1694_v7  ;;  %v1120_v57 = vsel %vm1024_vm11, %v2743_v10, %v1682_v48 }
 0x197   : > { %v1121_v41 = vsel %vm1025_vm12, %v2746_v19, %v1683_v47  ;;  %v1133_v18 = vsel %vm1037_vm10, %v2730_v22, %v1695_v25  ;;  %v1275_v52 = vmul.f32 %v1251_v56, %v1132_v37  ;;  %v1424_v15 = vadd.f32 %v1423_v44, %v1401_v50 }
 0x198   : > { %v1387_v46 = vpop.permute.xlu1 %1386  ;;  %v1276_v58 = vmul.f32 %v1251_v56, %v1133_v18  ;;  %v1433_v31 = vadd.f32 %v1432_v35, %v1402_v62  ;;  %v1331_v26 = vadd.f32 %v1330_v45, %v1273_v3  ;;  %v1322_v10 = vadd.f32 %v1321_v36, %v1272_v17 }
 0x199   : > { %v1395_v29 = vmul.f32 %v1387_v46, %v1120_v57  ;;  %v1396_v54 = vmul.f32 %v1387_v46, %v1121_v41  ;;  %v1403_v16 = vmul.f32 %v1387_v46, %v1132_v37  ;;  %v1404_v2 = vmul.f32 %v1387_v46, %v1133_v18 }
 0x19a   : > { %v1300_v48 = vadd.f32 %v2839_v12, %v1261_v30  ;;  %v1332_v14 = vadd.f32 %v1331_v26, %v1276_v58  ;;  %v1291_v22 = vadd.f32 %v2837_v9, %v2833_v6  ;;  %v2895_v25 = vsel %vm1174_vm2, %v1262_v8, 0.0 }
 0x19b   : > { %v1407_v13 = vadd.f32 %v1406_v5, %v1395_v29  ;;  %v1416_v42 = vadd.f32 %v1415_v61, %v1396_v54  ;;  %v1425_v7 = vadd.f32 %v1424_v15, %v1403_v16  ;;  %v1434_v19 = vadd.f32 %v1433_v31, %v1404_v2 }
 0x19c   : > { %v2897_v38 = vmul.f32 %v1148_v32, %v1131_v33  ;;  %v1313_v36 = vsel %vm1174_vm2, %v1274_v27, 0.0  ;;  %v1263_v17 = vmul.f32 %v1251_v56, %v1120_v57  ;;  %v1264_v12 = vmul.f32 %v1251_v56, %v1121_v41 }
 0x19d   : > { %v1140_v47 = vpop.permute.xlu1 %1139  ;;  %v1426_v30 = vrot.slane %v1425_v7, 4  ;;  %v1435_v3 = vrot.slane %v1434_v19, 4  ;;  %v2912_v62 = vmul.f32 %v1148_v32, %v1120_v57  ;;  %v2914_v5 = vmul.f32 %v1148_v32, %v1121_v41 }
 0x19e   : > { %v1153_v44 = vmul.f32 %v1140_v47, %v2751_v1  ;;  %v1154_v45 = vmul.f32 %v1140_v47, %v2761_v59  ;;  %v1165_v35 = vmul.f32 %v1140_v47, %v2663_v63  ;;  %v1166_v50 = vmul.f32 %v1140_v47, %v2688_v49 }
 0x19f   : > { %v1333_v1 = vrot.slane %v1332_v14, 4  ;;  %v1323_v59 = vadd.f32 %v1322_v10, %v1275_v52  ;;  %v1408_v56 = vrot.slane %v1407_v13, 4  ;;  %v1172_v61 = vmul.f32 %v1148_v32, %v1132_v37 }
 0x1a0   : > { %v2905_v6 = vsel %vm1174_vm2, %v1153_v44, 0.0  ;;  %v2907_v9 = vadd.f32 %v1154_v45, %v1151_v39  ;;  %v2910_v33 = vsel %vm1174_vm2, %v1165_v35, 0.0  ;;  %v1219_v63 = vadd.f32 %v1166_v50, %v1163_v51 }
 0x1a1   : > { %v2916_v8 = vmul.f32 %v1148_v32, %v1133_v18  ;;  %v1417_v49 = vrot.slane %v1416_v42, 4  ;;  %v1334_v27 = vadd.f32 %v1333_v1, %v1332_v14  ;;  %v1155_v46 = vmul.f32 %v1140_v47, %v2771_v40  ;;  %v1144_v41 = vpop.permute.xlu1 %1143 }
 0x1a2   : > { %v1324_v39 = vrot.slane %v1323_v59, 4  ;;  %v1301_v58 = vadd.f32 %v1300_v48, %v1264_v12  ;;  %v1292_v29 = vadd.f32 %v1291_v22, %v1263_v17  ;;  %v1436_v16 = vadd.f32 %v1435_v3, %v1434_v19 }
 0x1a3   : > { %v1335_v54 = vrot.slane %v1334_v27, 2  ;;  %v1427_v2 = vadd.f32 %v1426_v30, %v1425_v7  ;;  %v1314_v57 = vadd.f32 %v1313_v36, %v2824_v20  ;;  %v2920_v52 = vadd.f32 %v1408_v56, %v1407_v13 }
 0x1a4   : > { %v1325_v15 = vadd.f32 %v1324_v39, %v1323_v59  ;;  %v1302_v51 = vrot.slane %v1301_v58, 4  ;;  %v1293_v37 = vrot.slane %v1292_v29, 4  ;;  %v1418_v14 = vadd.f32 %v1417_v49, %v1416_v42 }
 0x1a5   : > { %v1336_v32 = vadd.f32 %v1335_v54, %v1334_v27  ;;  %v1428_v18 = vrot.slane %v1427_v2, 2  ;;  %v1315_v31 = vrot.slane %v1314_v57, 4  ;;  %v1167_v40 = vmul.f32 %v1140_v47, %v2696_v23 }
 0x1a6   : > { %v1326_v26 = vrot.slane %v1325_v15, 2  ;;  %v1303_v10 = vadd.f32 %v1302_v51, %v1301_v58  ;;  %v1294_v48 = vadd.f32 %v1293_v37, %v1292_v29  ;;  %v1156_v19 = vmul.f32 %v1144_v41, %v2794_v34 }
 0x1a7   : > { %v1337_v7 = vrot.slane %v1336_v32, 1  ;;  %v1437_v22 = vrot.slane %v1436_v16, 2  ;;  %v1316_v20 = vadd.f32 %v1315_v31, %v1314_v57  ;;  %v1157_v13 = vmul.f32 %v1144_v41, %v2812_v28 }
 0x1a8   : > { %v1327_v44 = vadd.f32 %v1326_v26, %v1325_v15  ;;  %v1304_v45 = vrot.slane %v1303_v10, 2  ;;  %v1295_v36 = vrot.slane %v1294_v48, 2  ;;  %v1169_v17 = vmul.f32 %v1144_v41, %v2781_v53 }
 0x1a9   : > { %v1338_v12 = vadd.f32 %v1337_v7, %v1336_v32  ;;  %v1429_v35 = vadd.f32 %v1428_v18, %v1427_v2  ;;  %v1419_v42 = vrot.slane %v1418_v14, 2  ;;  %v1317_v3 = vrot.slane %v1316_v20, 2 }
 0x1aa   : > { %v1328_v30 = vrot.slane %v1327_v44, 1  ;;  %v1305_v23 = vadd.f32 %v1304_v45, %v1303_v10  ;;  %v1296_v47 = vadd.f32 %v1295_v36, %v1294_v48  ;;  %v1158_v50 = vmul.f32 %v1144_v41, %v2830_v55  ;;  %v3025_v48 = vld [vmem:[#allocation7_spill] sm:$0xff] }
 0x1ab   : > { %v1170_v34 = vmul.f32 %v1144_v41, %v2786_v24  ;;  %1355 = vrot.lane.b32.xlu1 %v1338_v12, %s1910_s16  ;;  %v1438_v1 = vadd.f32 %v1437_v22, %v1436_v16  ;;  %v1283_v28 = vadd.f32 %v2895_v25, %v2822_v21  ;;  %v1168_v59 = vmul.f32 %v1144_v41, %v2776_v4 }
 0x1ac   : > { %v1329_v53 = vadd.f32 %v1328_v30, %v1327_v44  ;;  %v1306_v56 = vrot.slane %v1305_v23, 1  ;;  %v1297_v49 = vrot.slane %v1296_v47, 1  ;;  %v1430_v27 = vrot.slane %v1429_v35, 1 }
 0x1ad   : > { %v1284_v39 = vrot.slane %v1283_v28, 4  ;;  %v1228_v58 = vadd.f32 %v1167_v40, %v2875_v11  ;;  %v1220_v29 = vadd.f32 %v1219_v63, %v1169_v17  ;;  %v1318_v24 = vadd.f32 %v1317_v3, %v1316_v20 }
 0x1ae   : > { %1353 = vrot.lane.b32.xlu0 %v1329_v53, %s1910_s16  ;;  %v1298_v55 = vadd.f32 %v1297_v49, %v1296_v47  ;;  %v1420_v54 = vadd.f32 %v1419_v42, %v1418_v14  ;;  %v1189_v16 = vadd.f32 %v2907_v9, %v1157_v13  ;;  %v1439_v2 = vrot.slane %v1438_v1, 1 }
 0x1af   : > { %v1285_v57 = vadd.f32 %v1284_v39, %v1283_v28  ;;  %v1229_v21 = vadd.f32 %v1228_v58, %v1170_v34  ;;  %v1221_v25 = vadd.f32 %v1220_v29, %v1172_v61  ;;  %v1307_v4 = vadd.f32 %v1306_v56, %v1305_v23 }
 0x1b0   : > { %1347 = vrot.lane.b32.xlu1 %v1298_v55, %s1910_s16  ;;  %v1190_v41 = vadd.f32 %v1189_v16, %v2912_v62  ;;  %v1197_v15 = vadd.f32 %v1155_v46, %v2871_v60  ;;  %v1209_v11 = vsel %vm1174_vm2, %v1168_v59, 0.0  ;;  %v1431_v63 = vadd.f32 %v1430_v27, %v1429_v35  ;;  %v2959_v35 = vpop.permute.xlu0 %1474 }
 0x1b1   : > { %v1286_v51 = vrot.slane %v1285_v57, 2  ;;  %v1230_v37 = vadd.f32 %v1229_v21, %v2916_v8  ;;  %v1208_v9 = vadd.f32 %v2910_v33, %v2866_v0  ;;  %v1319_v32 = vrot.slane %v1318_v24, 1 }
 0x1b2   : > { %1349 = vrot.lane.b32.xlu0 %v1307_v4, %s1910_s16  ;;  %v1410_v61 = vrot.slane %v2920_v52, 2  ;;  %v1198_v18 = vadd.f32 %v1197_v15, %v1158_v50  ;;  %v1211_v62 = vsel %vm1174_vm2, %v2897_v38, 0.0  ;;  %v1421_v31 = vrot.slane %v1420_v54, 1 }
 0x1b3   : > { %v1287_v60 = vadd.f32 %v1286_v51, %v1285_v57  ;;  %v1210_v46 = vadd.f32 %v1209_v11, %v1208_v9  ;;  %v1440_v14 = vadd.f32 %v1439_v2, %v1438_v1  ;;  %v1178_v40 = vsel %vm1174_vm2, %v1156_v19, 0.0 }
 0x1b4   : > { %1449 = vrot.lane.b32.xlu1 %v1431_v63, %s1911_s22  ;;  %v1199_v8 = vadd.f32 %v1198_v18, %v2914_v5  ;;  %v1180_v0 = vsel %vm1174_vm2, %v2877_v43, 0.0  ;;  %v1320_v26 = vadd.f32 %v1319_v32, %v1318_v24  ;;  %v1411_v38 = vadd.f32 %v1410_v61, %v2920_v52 }
 0x1b5   : > { %v1212_v33 = vadd.f32 %v1211_v62, %v1210_v46  ;;  %v1288_v10 = vrot.slane %v1287_v60, 1  ;;  %v1177_v7 = vadd.f32 %v2905_v6, %v3025_v48  ;;  %v1422_v22 = vadd.f32 %v1421_v31, %v1420_v54 }
 0x1b6   : > { %1451 = vrot.lane.b32.xlu0 %v1440_v14, %s1911_s22  ;;  %v1412_v19 = vrot.slane %v1411_v38, 1  ;;  %v1231_v44 = vrot.slane %v1230_v37, 4  ;;  %v1222_v45 = vrot.slane %v1221_v25, 4  ;;  %v1200_v17 = vrot.slane %v1199_v8, 4 }
 0x1b7   : > { %v1179_v20 = vadd.f32 %v1178_v40, %v1177_v7  ;;  %v1289_v5 = vadd.f32 %v1288_v10, %v1287_v60  ;;  %v1213_v6 = vrot.slane %v1212_v33, 4  ;;  %v1191_v3 = vrot.slane %v1190_v41, 4 }
 0x1b8   : > { %1351 = vrot.lane.b32.xlu1 %v1320_v26, %s1910_s16  ;;  %v1413_v43 = vadd.f32 %v1412_v19, %v1411_v38  ;;  %v1232_v52 = vadd.f32 %v1231_v44, %v1230_v37  ;;  %v1223_v36 = vadd.f32 %v1222_v45, %v1221_v25  ;;  %v1201_v30 = vadd.f32 %v1200_v17, %v1199_v8 }
 0x1b9   : > { %v1181_v13 = vadd.f32 %v1180_v0, %v1179_v20  ;;  %v1214_v23 = vadd.f32 %v1213_v6, %v1212_v33  ;;  %v1192_v49 = vadd.f32 %v1191_v3, %v1190_v41  ;;  %v3026_v3 = vld [vmem:[#allocation6_spill] sm:$0xff]  ;;  %vm1538_vm14 = vcmask 1047559  }
 0x1ba   : > { %1447 = vrot.lane.b32.xlu0 %v1422_v22, %s1911_s22  ;;  %v1233_v12 = vrot.slane %v1232_v52, 2  ;;  %v1224_v42 = vrot.slane %v1223_v36, 2  ;;  %v1202_v28 = vrot.slane %v1201_v30, 2  ;;  %vm1543_vm15 = vcmask 15360  }
 0x1bb   : > { %v1182_v47 = vrot.slane %v1181_v13, 4  ;;  %v1215_v59 = vrot.slane %v1214_v23, 2  ;;  %v1193_v54 = vrot.slane %v1192_v49, 2 }
 0x1bc   : > { %1345 = vrot.lane.b32.xlu1 %v1289_v5, %s1910_s16  ;;  %v1234_v34 = vadd.f32 %v1233_v12, %v1232_v52  ;;  %v1225_v1 = vadd.f32 %v1224_v42, %v1223_v36  ;;  %v1203_v29 = vadd.f32 %v1202_v28, %v1201_v30  ;;  %s1915_s16 = smov [#allocation3]  }
 0x1bd   : > { %v1183_v53 = vadd.f32 %v1182_v47, %v1181_v13  ;;  %v1216_v55 = vadd.f32 %v1215_v59, %v1214_v23  ;;  %v1194_v37 = vadd.f32 %v1193_v54, %v1192_v49 }
 0x1be   : > { %v1235_v27 = vrot.slane %v1234_v34, 1  ;;  %v1226_v39 = vrot.slane %v1225_v1, 1  ;;  %v1204_v25 = vrot.slane %v1203_v29, 1 }
 0x1bf   : > { %v1184_v24 = vrot.slane %v1183_v53, 2  ;;  %v1217_v15 = vrot.slane %v1216_v55, 1  ;;  %v1195_v14 = vrot.slane %v1194_v37, 1 }
 0x1c0   : > { %1445 = vrot.lane.b32.xlu1 %v1413_v43, %s1911_s22  ;;  %v1236_v2 = vadd.f32 %v1235_v27, %v1234_v34  ;;  %v1227_v21 = vadd.f32 %v1226_v39, %v1225_v1  ;;  %v1205_v61 = vadd.f32 %v1204_v25, %v1203_v29  ;;  %s1846_s22 = sshll.u32 %s1915_s16, 4  ;;  %s1847_s22 = int_to_ptr.vmem [resolvable:$false] %s1846_s22 }
 0x1c1   : > { %v1185_v11 = vadd.f32 %v1184_v24, %v1183_v53  ;;  %v1218_v31 = vadd.f32 %v1217_v15, %v1216_v55  ;;  %v1196_v5 = vadd.f32 %v1195_v14, %v1194_v37  ;;  %s1848_s5 = scalar_lea.vmem %s1847_s22, 128  ;;  %p1849_p4 = scmp.lt.s32.totalorder %s1564_s15, %s1847_s22 }
 0x1c2   : > { %p1850_p7 = scmp.lt.s32.totalorder %s1848_s5, %s1842_s21 }
 0x1c3   : > { %v1186_v60 = vrot.slane %v1185_v11, 1 }
 0x1c4   : > { %p1851_p8 = por %p1850_p7, %p1849_p4 }
 0x1c5   : > { %v1187_v7 = vadd.f32 %v1186_v60, %v1185_v11 }
 0x1c6   : > { %p1852_p9 = pnand %p1851_p8, %p1845_p3 }
 0x21d   : > { %v1356_v50 = vpop.permute.xlu1 %1355 }
 0x21e   : > { %v1372_v63 = vadd.f32 %v1356_v50, %v1236_v2 }
 0x220   : > { %v1354_v56 = vpop.permute.xlu0 %1353 }
 0x221   : > { %v1360_v57 = vsel %vm639_vm0, %v1354_v56, %v1356_v50 }
 0x222   : > { %v1348_v58 = vpop.permute.xlu1 %1347  ;;  %v1371_v51 = vadd.f32 %v1360_v57, %v1227_v21  ;;  %v1840_v57 = vld [vmem:[%s2052_s30] sm:$0xf] }
 0x224   : > { %v1350_v16 = vpop.permute.xlu0 %1349 }
 0x225   : > { %v1369_v8 = vadd.f32 %v1350_v16, %v1205_v61  ;;  %v1358_v22 = vsel %vm639_vm0, %v1348_v58, %v1350_v16 }
 0x226   : > { %v1450_v4 = vpop.permute.xlu1 %1449  ;;  %v1368_v43 = vadd.f32 %v1358_v22, %v1196_v5 }
 0x228   : > { %v1452_v41 = vpop.permute.xlu0 %1451 }
 0x229   : > { %v1454_v9 = vsel %vm885_vm1, %v1450_v4, %v1452_v41  ;;  %v1466_v32 = vadd.f32 %v1452_v41, %v1372_v63 }
 0x22a   : > { %v1465_v18 = vadd.f32 %v1454_v9, %v1371_v51  ;;  %v1352_v62 = vpop.permute.xlu1 %1351 }
 0x22b   : > { %v1359_v46 = vsel %vm639_vm0, %v1352_v62, %v1354_v56  ;;  %v1482_v40 = vadd.f32 %v2959_v35, %v1466_v32 }
 0x22c   : > { %v1370_v0 = vadd.f32 %v1359_v46, %v1218_v31  ;;  %v1448_v33 = vpop.permute.xlu0 %1447  ;;  %v1481_v26 = vadd.f32 %v2959_v35, %v1465_v18 }
 0x22d   : > { %v1463_v38 = vadd.f32 %v1448_v33, %v1369_v8  ;;  %1828 = vtanh.f32 %v1482_v40 }
 0x22e   : > { %v1464_v10 = vadd.f32 %v1450_v4, %v1370_v0  ;;  %v1346_v48 = vpop.permute.xlu1 %1345  ;;  %1830 = vtanh.f32 %v1481_v26 }
 0x22f   : > { %v1357_v20 = vsel %vm639_vm0, %v1346_v48, %v1348_v58  ;;  %v1479_v44 = vadd.f32 %v2959_v35, %v1463_v38  ;;  %vm1532_vm0 = vcmask 1041409  }
 0x230   : > { %v1480_v19 = vadd.f32 %v2959_v35, %v1464_v10  ;;  %v1367_v13 = vadd.f32 %v1357_v20, %v1187_v7 }
 0x232   : > { %1832 = vtanh.f32 %v1480_v19  ;;  %v1446_v45 = vpop.permute.xlu1 %1445 }
 0x233   : > { %v1453_v52 = vsel %vm885_vm1, %v1446_v45, %v1448_v33  ;;  %v1461_v36 = vadd.f32 %v1446_v45, %v1367_v13  ;;  %1834 = vtanh.f32 %v1479_v44  ;;  %vm1534_vm1 = vcmask 1043459  }
 0x234   : > { %v1462_v17 = vadd.f32 %v1453_v52, %v1368_v43 }
 0x235   : > { %v1477_v6 = vadd.f32 %v2959_v35, %v1461_v36 }
 0x236   : > { %v1478_v12 = vadd.f32 %v2959_v35, %v1462_v17 }
 0x237   : > { %1836 = vtanh.f32 %v1477_v6 }
 0x238   : > { %1838 = vtanh.f32 %v1478_v12 }
 0x23a   : > { %v1829_v42 = vpop.eup %1828 }
 0x23b   : > { %v1831_v30 = vpop.eup %1830  ;;  %v1525_v34 = vrot.slane %v1829_v42, %v3026_v3 }
 0x23f   : > { %v1833_v23 = vpop.eup %1832 }
 0x240   : > { %v1511_v47 = vcombine.low %v1833_v23, %v1831_v30  ;;  %v1835_v1 = vpop.eup %1834 }
 0x241   : > { %v1509_v35 = vrot.slane %v1835_v1, %v3026_v3 }
 0x242   : > { %v1518_v50 = vrot.slane %v1511_v47, %v3026_v3 }
 0x244   : > { %v1837_v28 = vpop.eup %1836  ;;  %v1526_v59 = vcombine.low %v1518_v50, %v1525_v34 }
 0x245   : > { %v1839_v53 = vpop.eup %1838 }
 0x246   : > { %v1495_v56 = vcombine.low %v1837_v28, %v1839_v53  ;;  %v1531_v39 = vrot.slane %v1526_v59, 7 }
 0x248   : > { %v1502_v49 = vrot.slane %v1495_v56, %v3026_v3 }
 0x24a   : > { %v1510_v27 = vcombine.low %v1502_v49, %v1509_v35 }
 0x24c   : > { %v1533_v58 = vsel %vm1532_vm0, %v1531_v39, %v1510_v27 }
 0x24d   : > { %v1535_v29 = vsel %vm1534_vm1, %v1531_v39, %v1533_v58 }
 0x24e   : > { %v1537_v55 = vsel %vm1536_vm13, %v1531_v39, %v1535_v29 }
 0x24f   : > { %v1539_v24 = vsel %vm1538_vm14, %v1531_v39, %v1537_v55 }
 0x250   : > { %1540 = vrot.lane.b32.xlu1 %v1539_v24, %s1914_s10 }
 0x2c2   : > { %v1541_v54 = vpop.permute.xlu1 %1540 }
 0x2c3   : > { %v1542_v16 = vrot.slane %v1541_v54, 2 }
 0x2c5   : > { %v1544_v2 = vsel %vm1543_vm15, %v1541_v54, %v1542_v16 }
 0x2c6   : > { %v1546_v21 = vadd.f32 %v1840_v57, %v1544_v2 }
 0x2c8   : > { %1547 = vst [vmem:[%s313_s14] sm:$0xf] %v1546_v21 }
 0x2c9   : > { %1855 = shalt.err (!%p1852_p9)
}
 0x2ca   : > { %s1856_s30 = scalar_lea.hbm %s1561_s20, 64  ;;  %s1860_s10 = scalar_lea.hbm %s3018_s6, 256 }
 0x2cb   : > { %p1857_p10 = scmp.ne.s32.totalorder %s1561_s20, %s1856_s30  ;;  %p1861_p13 = scmp.lt.s32.totalorder %s1561_s20, %s3018_s6 }
 0x2cc   : > { %p1862_p0 = scmp.lt.s32.totalorder %s1860_s10, %s1856_s30 }
 0x2cd   : > { %p1858_p11 = pnand %p1857_p10, %p1994_p5 }
 0x2ce   : > { %p1863_p1 = por %p1862_p0, %p1861_p13 }
 0x2cf   : > { %p1859_p12 = pneg %p1858_p11 }
 0x2d1   : > { %p1864_p2 = pnand %p1863_p1, %p1859_p12 }
 0x2d3   : > { %1867 = shalt.err (!%p1864_p2)
}
 0x2d4   : > { %1713 = dma.vmem_to_hbm [thread:$0]  (%p1994_p5), %s1564_s15, 64, %s1561_s20, %s1549_s17  }
 0x2d5 PF: > { %p1719_p3 = scmp.ge.s32.totalorder %s1902_s26, 2  ;;  %s1575_s13 = sand.u32 1, %s1890_s23  }
 0x2d6   : > { %s1576_s14 = scalar_lea.sflag [#allocation4], %s1575_s13 }
 0x2d7   : > { %p1716_p4 = pnand %p1719_p3, %p1998_p6 }
 0x2d9   : > { %p1717_p7 = pneg %p1716_p4 }
 0x2db   : > { %1885 = dma.done.wait (%p1717_p7), %s1576_s14, 64  }
 0x2dc   : > { %1887 = vsyncadd (%p1717_p7), %s1576_s14, 4294967232  ;;  %p18_p8 = scmp.ge.s32.totalorder %s1979_s28, 6   ;;  %s3027_s23 = smov %s1894_s24 }
 0x2dd   : > { %s3028_s24 = smov %s1898_s25  ;;  %s3029_s25 = smov %s1990_s7 }
 0x2de   : > { %s3030_s26 = smov %s1979_s28  ;;  %20 = sbr.rel (!%p18_p8) target bundleno = 6 (0x6), region = 85 }
 0x2e3   :  { %1581 = vsyncpa [#allocation4], 1 }
 0x2e4   :  { %1583 = vsyncpa [#allocation4 + $0x1], 1 }

</bundles_post_ra>
